<compile_context>
chip_gen: v7x
topology: tpu7x:2x2x1
jax: 0.10.0
libtpu: 0.0.40
codegen_flags: <defaults>
</compile_context>

<pallas_src>
import math

import jax
import jax.numpy as jnp
from jax import lax
from jax.experimental import pallas as pl
from jax.experimental.pallas import tpu as pltpu


def _make_kernel(N, C, HW, TP, TK):
    num_k = HW // TK

    def kernel(x_cf_ref, x_flat_ref, w_ref, b_ref, sel_ref, o_ref, acc_sc):
        pi = pl.program_id(0)                        # query-tile index (parallel)
        p0 = pl.multiple_of(pi * TP, TP)

        # ---- q projection for this query tile, kept channels-first (C, TP) ----
        # 1/sqrt(C) is pre-folded into w[0]/b[0] by the wrapper.
        q_cf = []
        for n in range(N):                           # N is small & static
            xq_n = x_cf_ref[n, :, pl.ds(p0, TP)]     # (C, TP)
            q_cf.append(jnp.dot(w_ref[0], xq_n,
                                preferred_element_type=jnp.float32) + b_ref[0])

        # ---- key loop: the former key grid axis, collapsed into the kernel ----
        def key_step(ki, acc):
            k0 = pl.multiple_of(ki * TK, TK)
            k_cf, v_cf, s = [], [], []
            for n in range(N):
                xk_n = x_cf_ref[n, :, pl.ds(k0, TK)]                 # (C, TK)
                k_cf.append(jnp.dot(w_ref[1], xk_n,
                                    preferred_element_type=jnp.float32) + b_ref[1])
                v_cf.append(jnp.dot(w_ref[2], xk_n,
                                    preferred_element_type=jnp.float32) + b_ref[2])
                # scores (TP, TK): contract the channel dim of q and k directly
                # (q never materialized as a masked (TP, C) tile).
                s.append(lax.dot_general(q_cf[n], k_cf[n],
                                         (((0,), (0,)), ((), ())),
                                         preferred_element_type=jnp.float32))

            # softmax over the BATCH axis (torch F.softmax with no dim, 3-D input)
            if N == 2:
                # 2-way softmax == sigmoid: 1 exp + 1 exact reciprocal / element
                t = jnp.exp(s[1] - s[0])
                a0 = pl.reciprocal(1.0 + t)          # exact (keeps 1e-4 tolerance)
                a = [a0, 1.0 - a0]
            else:
                m = s[0]
                for n in range(1, N):
                    m = jnp.maximum(m, s[n])
                e = [jnp.exp(sn - m) for sn in s]
                z = e[0]
                for n in range(1, N):
                    z = z + e[n]
                inv_z = pl.reciprocal(z)
                a = [en * inv_z for en in e]

            new_acc = []
            for n in range(N):
                # PV: contract the key dim -> (C, TP), channels-first / lane-dense
                contrib = lax.dot_general(v_cf[n], a[n], (((1,), (1,)), ((), ())),
                                          preferred_element_type=jnp.float32)
                new_acc.append(acc[n] + contrib)
            return tuple(new_acc)

        acc0 = tuple(jnp.zeros((C, TP), jnp.float32) for _ in range(N))
        acc = lax.fori_loop(0, num_k, key_step, acc0, unroll=True)

        # stage the tiny register accumulator once so the finalize can read
        # lane-dense (N, TP) per-channel slices
        for n in range(N):
            acc_sc[n, :, :] = acc[n]

        # ---- finalize: lane-dense interleaved residual store -------------------
        # out_flat[n, p*C + c] = x_flat[n, p*C + c] + acc[n, c, p]
        # sel[c] is a host-precomputed (TP, L) 0/1 scatter matrix (exact:
        # exactly one nonzero per output column), so the interleave is pure MXU.
        res = x_flat_ref[...]                                        # (N, L)
        for c in range(C):
            res = res + jnp.dot(acc_sc[:, c, :], sel_ref[c],
                                preferred_element_type=jnp.float32)
        o_ref[...] = res.astype(o_ref.dtype)

    return kernel


def attention_pallas(x, wq, bq, wk, bk, wv, bv, *, tile_q=128, tile_k=128):
    """x: (N, C, H, W) f32; wq/wk/wv: (C_out, C_in); biases: (C,)."""
    N, C, H, W = x.shape
    HW = H * W
    # Tile sizes: lane-aligned when possible, otherwise a single full tile.
    TP = tile_q if HW % tile_q == 0 else HW
    TK = tile_k if HW % tile_k == 0 else HW
    assert HW % TP == 0 and HW % TK == 0
    num_p, num_k = HW // TP, HW // TK
    L = TP * C
    scale = 1.0 / math.sqrt(C)

    # Two zero-copy metadata views of the same x buffer (no wrapper transpose).
    x_cf = x.reshape(N, C, HW)            # channels-first, HW in lanes (resident)
    x_flat = x.reshape(N, C * H * W)      # raw bytes, for the residual add

    # Packed projection weights; softmax scale folded into the q projection.
    w_all = jnp.stack([wq * scale, wk, wv], axis=0)                   # (3, C, C)
    b_all = jnp.stack([bq * scale, bk, bv], axis=0).reshape(3, C, 1)  # (3, C, 1)

    # Host-precomputed 0/1 interleave matrices: sel[c, p, p*C + c] = 1.
    c_idx = jnp.arange(C)[:, None, None]
    p_idx = jnp.arange(TP)[None, :, None]
    l_idx = jnp.arange(L)[None, None, :]
    sel = (l_idx == p_idx * C + c_idx).astype(jnp.float32)            # (C, TP, L)

    kernel = _make_kernel(N, C, HW, TP, TK)

    n_transc = 2 if N == 2 else (N + 1)
    cost = pl.CostEstimate(
        flops=int(4 * N * HW * HW * C                      # scores + PV
                  + 2 * N * C * C * HW * (1 + 2 * num_p)   # q once, k/v per q-tile
                  + 2 * N * C * TP * L * num_p),           # finalize interleave
        transcendentals=int(n_transc * HW * HW),           # exp + reciprocal
        bytes_accessed=int(4 * (3 * N * C * HW             # x_cf + residual + out
                                + C * TP * L               # sel constants
                                + 3 * C * C + 3 * C)),     # packed weights/biases
    )

    out_flat = pl.pallas_call(
        kernel,
        out_shape=jax.ShapeDtypeStruct((N, C * H * W), jnp.float32),
        grid=(num_p,),
        in_specs=[
            pl.BlockSpec((N, C, HW), lambda pi: (0, 0, 0)),   # x, VMEM-resident
            pl.BlockSpec((N, L),     lambda pi: (0, pi)),     # x raw bytes (residual)
            pl.BlockSpec((3, C, C),  lambda pi: (0, 0, 0)),   # packed Wq*scale/Wk/Wv
            pl.BlockSpec((3, C, 1),  lambda pi: (0, 0, 0)),   # packed biases
            pl.BlockSpec((C, TP, L), lambda pi: (0, 0, 0)),   # interleave constants
        ],
        out_specs=pl.BlockSpec((N, L), lambda pi: (0, pi)),
        scratch_shapes=[pltpu.VMEM((N, C, TP), jnp.float32)],  # finalize staging
        compiler_params=pltpu.CompilerParams(
            dimension_semantics=("parallel",),
            # No vmem_limit override: footprint is ~2.5 MiB, far under every
            # generation's default scoped limit (and 64 MiB is ALL of v7x VMEM).
        ),
        cost_estimate=cost,
    )(x_cf, x_flat, w_all, b_all, sel)

    # raw reshape back to NCHW (pure metadata, matches torch's .reshape)
    return out_flat.reshape(N, C, H, W)


def attention_reference(x, wq, bq, wk, bk, wv, bv):
    """Pure-JAX reference mirroring the PyTorch module exactly."""
    N, C, H, W = x.shape
    HW = H * W

    def conv1x1(xx, w, b):
        return jnp.einsum('oc,nchw->nohw', w, xx) + b[None, :, None, None]

    q = conv1x1(x, wq, bq).reshape(N, C, HW).transpose(0, 2, 1)
    k = conv1x1(x, wk, bk).reshape(N, C, HW).transpose(0, 2, 1)
    v = conv1x1(x, wv, bv).reshape(N, C, HW).transpose(0, 2, 1)
    s = jnp.einsum('npc,nqc->npq', q, k) / math.sqrt(C)
    a = jax.nn.softmax(s, axis=0)              # dim=0, as torch picks for 3-D input
    attn = jnp.einsum('npq,nqc->npc', a, v)
    return x + attn.reshape(N, C, H, W)


if __name__ == "__main__":
    N, C, H, W = 2, 4, 16, 16

    key = jax.random.PRNGKey(0)
    kx, kq, kk, kv, kbq, kbk, kbv = jax.random.split(key, 7)
    bound = 1.0 / math.sqrt(C)   # Conv2d default init range (deterministic stand-in)

    x = jax.random.normal(kx, (N, C, H, W), dtype=jnp.float32)
    wq = jax.random.uniform(kq, (C, C), jnp.float32, -bound, bound)
    wk = jax.random.uniform(kk, (C, C), jnp.float32, -bound, bound)
    wv = jax.random.uniform(kv, (C, C), jnp.float32, -bound, bound)
    bq = jax.random.uniform(kbq, (C,), jnp.float32, -bound, bound)
    bk = jax.random.uniform(kbk, (C,), jnp.float32, -bound, bound)
    bv = jax.random.uniform(kbv, (C,), jnp.float32, -bound, bound)

    out = jax.jit(attention_pallas)(x, wq, bq, wk, bk, wv, bv)
    out = jax.block_until_ready(out)

    ref = attention_reference(x, wq, bq, wk, bk, wv, bv)
    err = float(jnp.max(jnp.abs(out - ref)))
    assert out.shape == (N, C, H, W)
    assert jnp.allclose(out, ref, atol=1e-4, rtol=1e-4), f"max abs err = {err}"

    print("KERNEL_OK")
</pallas_src>

<mosaic_0001>
module attributes {stable_mosaic.version = 11 : i64} {
  func.func @kernel(%arg0: i32, %arg1: memref<2x4x256xf32, #tpu.memory_space<vmem>>, %arg2: memref<2x512xf32, #tpu.memory_space<vmem>>, %arg3: memref<3x4x4xf32, #tpu.memory_space<vmem>>, %arg4: memref<3x4x1xf32, #tpu.memory_space<vmem>>, %arg5: memref<4x128x512xf32, #tpu.memory_space<vmem>>, %arg6: memref<2x512xf32, #tpu.memory_space<vmem>>, %arg7: memref<2x4x128xf32, #tpu.memory_space<vmem>>) attributes {dimension_semantics = [#tpu.dimension_semantics<parallel>], iteration_bounds = array<i64: 2>, scalar_prefetch = 0 : i64, scratch_operands = 1 : i64, tpu.core_type = #tpu.core_type<tc>, window_params = [{pipeline_mode = #tpu.pipeline_mode<synchronous>, transform_indices = @transform_0, window_bounds = array<i64: 2, 4, 256>}, {transform_indices = @transform_1, window_bounds = array<i64: 2, 512>}, {pipeline_mode = #tpu.pipeline_mode<synchronous>, transform_indices = @transform_2, window_bounds = array<i64: 3, 4, 4>}, {pipeline_mode = #tpu.pipeline_mode<synchronous>, transform_indices = @transform_3, window_bounds = array<i64: 3, 4, 1>}, {pipeline_mode = #tpu.pipeline_mode<synchronous>, transform_indices = @transform_4, window_bounds = array<i64: 4, 128, 512>}, {transform_indices = @transform_5, window_bounds = array<i64: 2, 512>}]} {
    %c128_i32 = arith.constant 128 : i32
    %0 = arith.muli %arg0, %c128_i32 : i32
    %1 = tpu.assume_multiple %0, 128 : i32
    %c0 = arith.constant 0 : index
    %c0_0 = arith.constant 0 : index
    %2 = arith.index_cast %1 : i32 to index
    %3 = vector.load %arg1[%c0, %c0_0, %2] : memref<2x4x256xf32, #tpu.memory_space<vmem>>, vector<1x4x128xf32>
    %4 = vector.shape_cast %3 : vector<1x4x128xf32> to vector<4x128xf32>
    %c0_1 = arith.constant 0 : index
    %c0_2 = arith.constant 0 : index
    %c0_3 = arith.constant 0 : index
    %5 = vector.load %arg3[%c0_1, %c0_2, %c0_3] : memref<3x4x4xf32, #tpu.memory_space<vmem>>, vector<1x4x4xf32>
    %6 = vector.shape_cast %5 : vector<1x4x4xf32> to vector<4x4xf32>
    %cst = arith.constant dense<0.000000e+00> : vector<4x128xf32>
    %7 = tpu.matmul %6, %4, %cst {dimension_numbers = #tpu.dot_dimension_numbers<[1], [0], [0], [1], [0, 0, 1, 1], [], []>} : vector<4x4xf32>, vector<4x128xf32>, vector<4x128xf32> -> vector<4x128xf32>
    %c0_4 = arith.constant 0 : index
    %c0_5 = arith.constant 0 : index
    %c0_6 = arith.constant 0 : index
    %8 = vector.load %arg4[%c0_4, %c0_5, %c0_6] : memref<3x4x1xf32, #tpu.memory_space<vmem>>, vector<1x4x1xf32>
    %9 = vector.shape_cast %8 : vector<1x4x1xf32> to vector<4x1xf32>
    %10 = vector.broadcast %9 : vector<4x1xf32> to vector<4x128xf32>
    %11 = arith.addf %7, %10 : vector<4x128xf32>
    %c1 = arith.constant 1 : index
    %c0_7 = arith.constant 0 : index
    %12 = arith.index_cast %1 : i32 to index
    %13 = vector.load %arg1[%c1, %c0_7, %12] : memref<2x4x256xf32, #tpu.memory_space<vmem>>, vector<1x4x128xf32>
    %14 = vector.shape_cast %13 : vector<1x4x128xf32> to vector<4x128xf32>
    %c0_8 = arith.constant 0 : index
    %c0_9 = arith.constant 0 : index
    %c0_10 = arith.constant 0 : index
    %15 = vector.load %arg3[%c0_8, %c0_9, %c0_10] : memref<3x4x4xf32, #tpu.memory_space<vmem>>, vector<1x4x4xf32>
    %16 = vector.shape_cast %15 : vector<1x4x4xf32> to vector<4x4xf32>
    %cst_11 = arith.constant dense<0.000000e+00> : vector<4x128xf32>
    %17 = tpu.matmul %16, %14, %cst_11 {dimension_numbers = #tpu.dot_dimension_numbers<[1], [0], [0], [1], [0, 0, 1, 1], [], []>} : vector<4x4xf32>, vector<4x128xf32>, vector<4x128xf32> -> vector<4x128xf32>
    %c0_12 = arith.constant 0 : index
    %c0_13 = arith.constant 0 : index
    %c0_14 = arith.constant 0 : index
    %18 = vector.load %arg4[%c0_12, %c0_13, %c0_14] : memref<3x4x1xf32, #tpu.memory_space<vmem>>, vector<1x4x1xf32>
    %19 = vector.shape_cast %18 : vector<1x4x1xf32> to vector<4x1xf32>
    %20 = vector.broadcast %19 : vector<4x1xf32> to vector<4x128xf32>
    %21 = arith.addf %17, %20 : vector<4x128xf32>
    %cst_15 = arith.constant 0.000000e+00 : f32
    %22 = vector.broadcast %cst_15 : f32 to vector<4x128xf32>
    %cst_16 = arith.constant 0.000000e+00 : f32
    %23 = vector.broadcast %cst_16 : f32 to vector<4x128xf32>
    %c0_i32 = arith.constant 0 : i32
    %c128_i32_17 = arith.constant 128 : i32
    %24 = arith.muli %c0_i32, %c128_i32_17 : i32
    %25 = tpu.assume_multiple %24, 128 : i32
    %c0_18 = arith.constant 0 : index
    %c0_19 = arith.constant 0 : index
    %26 = arith.index_cast %25 : i32 to index
    %27 = vector.load %arg1[%c0_18, %c0_19, %26] : memref<2x4x256xf32, #tpu.memory_space<vmem>>, vector<1x4x128xf32>
    %28 = vector.shape_cast %27 : vector<1x4x128xf32> to vector<4x128xf32>
    %c1_20 = arith.constant 1 : index
    %c0_21 = arith.constant 0 : index
    %c0_22 = arith.constant 0 : index
    %29 = vector.load %arg3[%c1_20, %c0_21, %c0_22] : memref<3x4x4xf32, #tpu.memory_space<vmem>>, vector<1x4x4xf32>
    %30 = vector.shape_cast %29 : vector<1x4x4xf32> to vector<4x4xf32>
    %cst_23 = arith.constant dense<0.000000e+00> : vector<4x128xf32>
    %31 = tpu.matmul %30, %28, %cst_23 {dimension_numbers = #tpu.dot_dimension_numbers<[1], [0], [0], [1], [0, 0, 1, 1], [], []>} : vector<4x4xf32>, vector<4x128xf32>, vector<4x128xf32> -> vector<4x128xf32>
    %c1_24 = arith.constant 1 : index
    %c0_25 = arith.constant 0 : index
    %c0_26 = arith.constant 0 : index
    %32 = vector.load %arg4[%c1_24, %c0_25, %c0_26] : memref<3x4x1xf32, #tpu.memory_space<vmem>>, vector<1x4x1xf32>
    %33 = vector.shape_cast %32 : vector<1x4x1xf32> to vector<4x1xf32>
    %34 = vector.broadcast %33 : vector<4x1xf32> to vector<4x128xf32>
    %35 = arith.addf %31, %34 : vector<4x128xf32>
    %c2 = arith.constant 2 : index
    %c0_27 = arith.constant 0 : index
    %c0_28 = arith.constant 0 : index
    %36 = vector.load %arg3[%c2, %c0_27, %c0_28] : memref<3x4x4xf32, #tpu.memory_space<vmem>>, vector<1x4x4xf32>
    %37 = vector.shape_cast %36 : vector<1x4x4xf32> to vector<4x4xf32>
    %cst_29 = arith.constant dense<0.000000e+00> : vector<4x128xf32>
    %38 = tpu.matmul %37, %28, %cst_29 {dimension_numbers = #tpu.dot_dimension_numbers<[1], [0], [0], [1], [0, 0, 1, 1], [], []>} : vector<4x4xf32>, vector<4x128xf32>, vector<4x128xf32> -> vector<4x128xf32>
    %c2_30 = arith.constant 2 : index
    %c0_31 = arith.constant 0 : index
    %c0_32 = arith.constant 0 : index
    %39 = vector.load %arg4[%c2_30, %c0_31, %c0_32] : memref<3x4x1xf32, #tpu.memory_space<vmem>>, vector<1x4x1xf32>
    %40 = vector.shape_cast %39 : vector<1x4x1xf32> to vector<4x1xf32>
    %41 = vector.broadcast %40 : vector<4x1xf32> to vector<4x128xf32>
    %42 = arith.addf %38, %41 : vector<4x128xf32>
    %cst_33 = arith.constant dense<0.000000e+00> : vector<128x128xf32>
    %43 = tpu.matmul %11, %35, %cst_33 {dimension_numbers = #tpu.dot_dimension_numbers<[0], [0], [1], [1], [0, 1, 1, 1], [], []>} : vector<4x128xf32>, vector<4x128xf32>, vector<128x128xf32> -> vector<128x128xf32>
    %c1_34 = arith.constant 1 : index
    %c0_35 = arith.constant 0 : index
    %44 = arith.index_cast %25 : i32 to index
    %45 = vector.load %arg1[%c1_34, %c0_35, %44] : memref<2x4x256xf32, #tpu.memory_space<vmem>>, vector<1x4x128xf32>
    %46 = vector.shape_cast %45 : vector<1x4x128xf32> to vector<4x128xf32>
    %c1_36 = arith.constant 1 : index
    %c0_37 = arith.constant 0 : index
    %c0_38 = arith.constant 0 : index
    %47 = vector.load %arg3[%c1_36, %c0_37, %c0_38] : memref<3x4x4xf32, #tpu.memory_space<vmem>>, vector<1x4x4xf32>
    %48 = vector.shape_cast %47 : vector<1x4x4xf32> to vector<4x4xf32>
    %cst_39 = arith.constant dense<0.000000e+00> : vector<4x128xf32>
    %49 = tpu.matmul %48, %46, %cst_39 {dimension_numbers = #tpu.dot_dimension_numbers<[1], [0], [0], [1], [0, 0, 1, 1], [], []>} : vector<4x4xf32>, vector<4x128xf32>, vector<4x128xf32> -> vector<4x128xf32>
    %c1_40 = arith.constant 1 : index
    %c0_41 = arith.constant 0 : index
    %c0_42 = arith.constant 0 : index
    %50 = vector.load %arg4[%c1_40, %c0_41, %c0_42] : memref<3x4x1xf32, #tpu.memory_space<vmem>>, vector<1x4x1xf32>
    %51 = vector.shape_cast %50 : vector<1x4x1xf32> to vector<4x1xf32>
    %52 = vector.broadcast %51 : vector<4x1xf32> to vector<4x128xf32>
    %53 = arith.addf %49, %52 : vector<4x128xf32>
    %c2_43 = arith.constant 2 : index
    %c0_44 = arith.constant 0 : index
    %c0_45 = arith.constant 0 : index
    %54 = vector.load %arg3[%c2_43, %c0_44, %c0_45] : memref<3x4x4xf32, #tpu.memory_space<vmem>>, vector<1x4x4xf32>
    %55 = vector.shape_cast %54 : vector<1x4x4xf32> to vector<4x4xf32>
    %cst_46 = arith.constant dense<0.000000e+00> : vector<4x128xf32>
    %56 = tpu.matmul %55, %46, %cst_46 {dimension_numbers = #tpu.dot_dimension_numbers<[1], [0], [0], [1], [0, 0, 1, 1], [], []>} : vector<4x4xf32>, vector<4x128xf32>, vector<4x128xf32> -> vector<4x128xf32>
    %c2_47 = arith.constant 2 : index
    %c0_48 = arith.constant 0 : index
    %c0_49 = arith.constant 0 : index
    %57 = vector.load %arg4[%c2_47, %c0_48, %c0_49] : memref<3x4x1xf32, #tpu.memory_space<vmem>>, vector<1x4x1xf32>
    %58 = vector.shape_cast %57 : vector<1x4x1xf32> to vector<4x1xf32>
    %59 = vector.broadcast %58 : vector<4x1xf32> to vector<4x128xf32>
    %60 = arith.addf %56, %59 : vector<4x128xf32>
    %cst_50 = arith.constant dense<0.000000e+00> : vector<128x128xf32>
    %61 = tpu.matmul %21, %53, %cst_50 {dimension_numbers = #tpu.dot_dimension_numbers<[0], [0], [1], [1], [0, 1, 1, 1], [], []>} : vector<4x128xf32>, vector<4x128xf32>, vector<128x128xf32> -> vector<128x128xf32>
    %62 = arith.subf %61, %43 : vector<128x128xf32>
    %63 = math.exp %62 : vector<128x128xf32>
    %cst_51 = arith.constant 1.000000e+00 : f32
    %64 = vector.broadcast %cst_51 : f32 to vector<128x128xf32>
    %65 = arith.addf %64, %63 : vector<128x128xf32>
    %66 = tpu.reciprocal %65 : vector<128x128xf32> -> vector<128x128xf32>
    %cst_52 = arith.constant 1.000000e+00 : f32
    %67 = vector.broadcast %cst_52 : f32 to vector<128x128xf32>
    %68 = arith.subf %67, %66 : vector<128x128xf32>
    %cst_53 = arith.constant dense<0.000000e+00> : vector<4x128xf32>
    %69 = tpu.matmul %42, %66, %cst_53 {dimension_numbers = #tpu.dot_dimension_numbers<[1], [1], [0], [0], [0, 0, 1, 0], [], []>} : vector<4x128xf32>, vector<128x128xf32>, vector<4x128xf32> -> vector<4x128xf32>
    %70 = arith.addf %22, %69 : vector<4x128xf32>
    %cst_54 = arith.constant dense<0.000000e+00> : vector<4x128xf32>
    %71 = tpu.matmul %60, %68, %cst_54 {dimension_numbers = #tpu.dot_dimension_numbers<[1], [1], [0], [0], [0, 0, 1, 0], [], []>} : vector<4x128xf32>, vector<128x128xf32>, vector<4x128xf32> -> vector<4x128xf32>
    %72 = arith.addf %23, %71 : vector<4x128xf32>
    %c1_i32 = arith.constant 1 : i32
    %c128_i32_55 = arith.constant 128 : i32
    %73 = arith.muli %c1_i32, %c128_i32_55 : i32
    %74 = tpu.assume_multiple %73, 128 : i32
    %c0_56 = arith.constant 0 : index
    %c0_57 = arith.constant 0 : index
    %75 = arith.index_cast %74 : i32 to index
    %76 = vector.load %arg1[%c0_56, %c0_57, %75] : memref<2x4x256xf32, #tpu.memory_space<vmem>>, vector<1x4x128xf32>
    %77 = vector.shape_cast %76 : vector<1x4x128xf32> to vector<4x128xf32>
    %c1_58 = arith.constant 1 : index
    %c0_59 = arith.constant 0 : index
    %c0_60 = arith.constant 0 : index
    %78 = vector.load %arg3[%c1_58, %c0_59, %c0_60] : memref<3x4x4xf32, #tpu.memory_space<vmem>>, vector<1x4x4xf32>
    %79 = vector.shape_cast %78 : vector<1x4x4xf32> to vector<4x4xf32>
    %cst_61 = arith.constant dense<0.000000e+00> : vector<4x128xf32>
    %80 = tpu.matmul %79, %77, %cst_61 {dimension_numbers = #tpu.dot_dimension_numbers<[1], [0], [0], [1], [0, 0, 1, 1], [], []>} : vector<4x4xf32>, vector<4x128xf32>, vector<4x128xf32> -> vector<4x128xf32>
    %c1_62 = arith.constant 1 : index
    %c0_63 = arith.constant 0 : index
    %c0_64 = arith.constant 0 : index
    %81 = vector.load %arg4[%c1_62, %c0_63, %c0_64] : memref<3x4x1xf32, #tpu.memory_space<vmem>>, vector<1x4x1xf32>
    %82 = vector.shape_cast %81 : vector<1x4x1xf32> to vector<4x1xf32>
    %83 = vector.broadcast %82 : vector<4x1xf32> to vector<4x128xf32>
    %84 = arith.addf %80, %83 : vector<4x128xf32>
    %c2_65 = arith.constant 2 : index
    %c0_66 = arith.constant 0 : index
    %c0_67 = arith.constant 0 : index
    %85 = vector.load %arg3[%c2_65, %c0_66, %c0_67] : memref<3x4x4xf32, #tpu.memory_space<vmem>>, vector<1x4x4xf32>
    %86 = vector.shape_cast %85 : vector<1x4x4xf32> to vector<4x4xf32>
    %cst_68 = arith.constant dense<0.000000e+00> : vector<4x128xf32>
    %87 = tpu.matmul %86, %77, %cst_68 {dimension_numbers = #tpu.dot_dimension_numbers<[1], [0], [0], [1], [0, 0, 1, 1], [], []>} : vector<4x4xf32>, vector<4x128xf32>, vector<4x128xf32> -> vector<4x128xf32>
    %c2_69 = arith.constant 2 : index
    %c0_70 = arith.constant 0 : index
    %c0_71 = arith.constant 0 : index
    %88 = vector.load %arg4[%c2_69, %c0_70, %c0_71] : memref<3x4x1xf32, #tpu.memory_space<vmem>>, vector<1x4x1xf32>
    %89 = vector.shape_cast %88 : vector<1x4x1xf32> to vector<4x1xf32>
    %90 = vector.broadcast %89 : vector<4x1xf32> to vector<4x128xf32>
    %91 = arith.addf %87, %90 : vector<4x128xf32>
    %cst_72 = arith.constant dense<0.000000e+00> : vector<128x128xf32>
    %92 = tpu.matmul %11, %84, %cst_72 {dimension_numbers = #tpu.dot_dimension_numbers<[0], [0], [1], [1], [0, 1, 1, 1], [], []>} : vector<4x128xf32>, vector<4x128xf32>, vector<128x128xf32> -> vector<128x128xf32>
    %c1_73 = arith.constant 1 : index
    %c0_74 = arith.constant 0 : index
    %93 = arith.index_cast %74 : i32 to index
    %94 = vector.load %arg1[%c1_73, %c0_74, %93] : memref<2x4x256xf32, #tpu.memory_space<vmem>>, vector<1x4x128xf32>
    %95 = vector.shape_cast %94 : vector<1x4x128xf32> to vector<4x128xf32>
    %c1_75 = arith.constant 1 : index
    %c0_76 = arith.constant 0 : index
    %c0_77 = arith.constant 0 : index
    %96 = vector.load %arg3[%c1_75, %c0_76, %c0_77] : memref<3x4x4xf32, #tpu.memory_space<vmem>>, vector<1x4x4xf32>
    %97 = vector.shape_cast %96 : vector<1x4x4xf32> to vector<4x4xf32>
    %cst_78 = arith.constant dense<0.000000e+00> : vector<4x128xf32>
    %98 = tpu.matmul %97, %95, %cst_78 {dimension_numbers = #tpu.dot_dimension_numbers<[1], [0], [0], [1], [0, 0, 1, 1], [], []>} : vector<4x4xf32>, vector<4x128xf32>, vector<4x128xf32> -> vector<4x128xf32>
    %c1_79 = arith.constant 1 : index
    %c0_80 = arith.constant 0 : index
    %c0_81 = arith.constant 0 : index
    %99 = vector.load %arg4[%c1_79, %c0_80, %c0_81] : memref<3x4x1xf32, #tpu.memory_space<vmem>>, vector<1x4x1xf32>
    %100 = vector.shape_cast %99 : vector<1x4x1xf32> to vector<4x1xf32>
    %101 = vector.broadcast %100 : vector<4x1xf32> to vector<4x128xf32>
    %102 = arith.addf %98, %101 : vector<4x128xf32>
    %c2_82 = arith.constant 2 : index
    %c0_83 = arith.constant 0 : index
    %c0_84 = arith.constant 0 : index
    %103 = vector.load %arg3[%c2_82, %c0_83, %c0_84] : memref<3x4x4xf32, #tpu.memory_space<vmem>>, vector<1x4x4xf32>
    %104 = vector.shape_cast %103 : vector<1x4x4xf32> to vector<4x4xf32>
    %cst_85 = arith.constant dense<0.000000e+00> : vector<4x128xf32>
    %105 = tpu.matmul %104, %95, %cst_85 {dimension_numbers = #tpu.dot_dimension_numbers<[1], [0], [0], [1], [0, 0, 1, 1], [], []>} : vector<4x4xf32>, vector<4x128xf32>, vector<4x128xf32> -> vector<4x128xf32>
    %c2_86 = arith.constant 2 : index
    %c0_87 = arith.constant 0 : index
    %c0_88 = arith.constant 0 : index
    %106 = vector.load %arg4[%c2_86, %c0_87, %c0_88] : memref<3x4x1xf32, #tpu.memory_space<vmem>>, vector<1x4x1xf32>
    %107 = vector.shape_cast %106 : vector<1x4x1xf32> to vector<4x1xf32>
    %108 = vector.broadcast %107 : vector<4x1xf32> to vector<4x128xf32>
    %109 = arith.addf %105, %108 : vector<4x128xf32>
    %cst_89 = arith.constant dense<0.000000e+00> : vector<128x128xf32>
    %110 = tpu.matmul %21, %102, %cst_89 {dimension_numbers = #tpu.dot_dimension_numbers<[0], [0], [1], [1], [0, 1, 1, 1], [], []>} : vector<4x128xf32>, vector<4x128xf32>, vector<128x128xf32> -> vector<128x128xf32>
    %111 = arith.subf %110, %92 : vector<128x128xf32>
    %112 = math.exp %111 : vector<128x128xf32>
    %cst_90 = arith.constant 1.000000e+00 : f32
    %113 = vector.broadcast %cst_90 : f32 to vector<128x128xf32>
    %114 = arith.addf %113, %112 : vector<128x128xf32>
    %115 = tpu.reciprocal %114 : vector<128x128xf32> -> vector<128x128xf32>
    %cst_91 = arith.constant 1.000000e+00 : f32
    %116 = vector.broadcast %cst_91 : f32 to vector<128x128xf32>
    %117 = arith.subf %116, %115 : vector<128x128xf32>
    %cst_92 = arith.constant dense<0.000000e+00> : vector<4x128xf32>
    %118 = tpu.matmul %91, %115, %cst_92 {dimension_numbers = #tpu.dot_dimension_numbers<[1], [1], [0], [0], [0, 0, 1, 0], [], []>} : vector<4x128xf32>, vector<128x128xf32>, vector<4x128xf32> -> vector<4x128xf32>
    %119 = arith.addf %70, %118 : vector<4x128xf32>
    %cst_93 = arith.constant dense<0.000000e+00> : vector<4x128xf32>
    %120 = tpu.matmul %109, %117, %cst_93 {dimension_numbers = #tpu.dot_dimension_numbers<[1], [1], [0], [0], [0, 0, 1, 0], [], []>} : vector<4x128xf32>, vector<128x128xf32>, vector<4x128xf32> -> vector<4x128xf32>
    %121 = arith.addf %72, %120 : vector<4x128xf32>
    %c2_i32 = arith.constant 2 : i32
    %c0_94 = arith.constant 0 : index
    %c0_95 = arith.constant 0 : index
    %c0_96 = arith.constant 0 : index
    %122 = vector.load %arg7[%c0_94, %c0_95, %c0_96] : memref<2x4x128xf32, #tpu.memory_space<vmem>>, vector<1x4x128xf32>
    %123 = vector.shape_cast %122 : vector<1x4x128xf32> to vector<4x128xf32>
    %124 = vector.shape_cast %119 : vector<4x128xf32> to vector<1x4x128xf32>
    tpu.vector_store %arg7[%c0_94, %c0_95, %c0_96], %124 {strides = array<i32>} : memref<2x4x128xf32, #tpu.memory_space<vmem>>, vector<1x4x128xf32>,
    %c1_97 = arith.constant 1 : index
    %c0_98 = arith.constant 0 : index
    %c0_99 = arith.constant 0 : index
    %125 = vector.load %arg7[%c1_97, %c0_98, %c0_99] : memref<2x4x128xf32, #tpu.memory_space<vmem>>, vector<1x4x128xf32>
    %126 = vector.shape_cast %125 : vector<1x4x128xf32> to vector<4x128xf32>
    %127 = vector.shape_cast %121 : vector<4x128xf32> to vector<1x4x128xf32>
    tpu.vector_store %arg7[%c1_97, %c0_98, %c0_99], %127 {strides = array<i32>} : memref<2x4x128xf32, #tpu.memory_space<vmem>>, vector<1x4x128xf32>,
    %c0_100 = arith.constant 0 : index
    %c0_101 = arith.constant 0 : index
    %128 = vector.load %arg2[%c0_100, %c0_101] : memref<2x512xf32, #tpu.memory_space<vmem>>, vector<2x512xf32>
    %c0_102 = arith.constant 0 : index
    %c0_103 = arith.constant 0 : index
    %c0_104 = arith.constant 0 : index
    %129 = vector.load %arg7[%c0_102, %c0_103, %c0_104] : memref<2x4x128xf32, #tpu.memory_space<vmem>>, vector<2x1x128xf32>
    %130 = vector.shape_cast %129 : vector<2x1x128xf32> to vector<2x128xf32>
    %c0_105 = arith.constant 0 : index
    %c0_106 = arith.constant 0 : index
    %c0_107 = arith.constant 0 : index
    %131 = vector.load %arg5[%c0_105, %c0_106, %c0_107] : memref<4x128x512xf32, #tpu.memory_space<vmem>>, vector<1x128x512xf32>
    %132 = vector.shape_cast %131 : vector<1x128x512xf32> to vector<128x512xf32>
    %cst_108 = arith.constant dense<0.000000e+00> : vector<2x512xf32>
    %133 = tpu.matmul %130, %132, %cst_108 {dimension_numbers = #tpu.dot_dimension_numbers<[1], [0], [0], [1], [0, 0, 1, 1], [], []>} : vector<2x128xf32>, vector<128x512xf32>, vector<2x512xf32> -> vector<2x512xf32>
    %134 = arith.addf %128, %133 : vector<2x512xf32>
    %c0_109 = arith.constant 0 : index
    %c1_110 = arith.constant 1 : index
    %c0_111 = arith.constant 0 : index
    %135 = vector.load %arg7[%c0_109, %c1_110, %c0_111] : memref<2x4x128xf32, #tpu.memory_space<vmem>>, vector<2x1x128xf32>
    %136 = vector.shape_cast %135 : vector<2x1x128xf32> to vector<2x128xf32>
    %c1_112 = arith.constant 1 : index
    %c0_113 = arith.constant 0 : index
    %c0_114 = arith.constant 0 : index
    %137 = vector.load %arg5[%c1_112, %c0_113, %c0_114] : memref<4x128x512xf32, #tpu.memory_space<vmem>>, vector<1x128x512xf32>
    %138 = vector.shape_cast %137 : vector<1x128x512xf32> to vector<128x512xf32>
    %cst_115 = arith.constant dense<0.000000e+00> : vector<2x512xf32>
    %139 = tpu.matmul %136, %138, %cst_115 {dimension_numbers = #tpu.dot_dimension_numbers<[1], [0], [0], [1], [0, 0, 1, 1], [], []>} : vector<2x128xf32>, vector<128x512xf32>, vector<2x512xf32> -> vector<2x512xf32>
    %140 = arith.addf %134, %139 : vector<2x512xf32>
    %c0_116 = arith.constant 0 : index
    %c2_117 = arith.constant 2 : index
    %c0_118 = arith.constant 0 : index
    %141 = vector.load %arg7[%c0_116, %c2_117, %c0_118] : memref<2x4x128xf32, #tpu.memory_space<vmem>>, vector<2x1x128xf32>
    %142 = vector.shape_cast %141 : vector<2x1x128xf32> to vector<2x128xf32>
    %c2_119 = arith.constant 2 : index
    %c0_120 = arith.constant 0 : index
    %c0_121 = arith.constant 0 : index
    %143 = vector.load %arg5[%c2_119, %c0_120, %c0_121] : memref<4x128x512xf32, #tpu.memory_space<vmem>>, vector<1x128x512xf32>
    %144 = vector.shape_cast %143 : vector<1x128x512xf32> to vector<128x512xf32>
    %cst_122 = arith.constant dense<0.000000e+00> : vector<2x512xf32>
    %145 = tpu.matmul %142, %144, %cst_122 {dimension_numbers = #tpu.dot_dimension_numbers<[1], [0], [0], [1], [0, 0, 1, 1], [], []>} : vector<2x128xf32>, vector<128x512xf32>, vector<2x512xf32> -> vector<2x512xf32>
    %146 = arith.addf %140, %145 : vector<2x512xf32>
    %c0_123 = arith.constant 0 : index
    %c3 = arith.constant 3 : index
    %c0_124 = arith.constant 0 : index
    %147 = vector.load %arg7[%c0_123, %c3, %c0_124] : memref<2x4x128xf32, #tpu.memory_space<vmem>>, vector<2x1x128xf32>
    %148 = vector.shape_cast %147 : vector<2x1x128xf32> to vector<2x128xf32>
    %c3_125 = arith.constant 3 : index
    %c0_126 = arith.constant 0 : index
    %c0_127 = arith.constant 0 : index
    %149 = vector.load %arg5[%c3_125, %c0_126, %c0_127] : memref<4x128x512xf32, #tpu.memory_space<vmem>>, vector<1x128x512xf32>
    %150 = vector.shape_cast %149 : vector<1x128x512xf32> to vector<128x512xf32>
    %cst_128 = arith.constant dense<0.000000e+00> : vector<2x512xf32>
    %151 = tpu.matmul %148, %150, %cst_128 {dimension_numbers = #tpu.dot_dimension_numbers<[1], [0], [0], [1], [0, 0, 1, 1], [], []>} : vector<2x128xf32>, vector<128x512xf32>, vector<2x512xf32> -> vector<2x512xf32>
    %152 = arith.addf %146, %151 : vector<2x512xf32>
    %c0_129 = arith.constant 0 : index
    %c0_130 = arith.constant 0 : index
    %153 = vector.load %arg6[%c0_129, %c0_130] : memref<2x512xf32, #tpu.memory_space<vmem>>, vector<2x512xf32>
    tpu.vector_store %arg6[%c0_129, %c0_130], %152 {strides = array<i32>} : memref<2x512xf32, #tpu.memory_space<vmem>>, vector<2x512xf32>,
    return
  }
  func.func @transform_0(%arg0: i32) -> (i32, i32, i32) {
    %c0_i32 = arith.constant 0 : i32
    %c0_i32_0 = arith.constant 0 : i32
    %c0_i32_1 = arith.constant 0 : i32
    %c0_i32_2 = arith.constant 0 : i32
    return %c0_i32, %c0_i32_0, %c0_i32_1 : i32, i32, i32
  }
  func.func @transform_1(%arg0: i32) -> (i32, i32) {
    %c0_i32 = arith.constant 0 : i32
    %c0_i32_0 = arith.constant 0 : i32
    return %c0_i32, %arg0 : i32, i32
  }
  func.func @transform_2(%arg0: i32) -> (i32, i32, i32) {
    %c0_i32 = arith.constant 0 : i32
    %c0_i32_0 = arith.constant 0 : i32
    %c0_i32_1 = arith.constant 0 : i32
    %c0_i32_2 = arith.constant 0 : i32
    return %c0_i32, %c0_i32_0, %c0_i32_1 : i32, i32, i32
  }
  func.func @transform_3(%arg0: i32) -> (i32, i32, i32) {
    %c0_i32 = arith.constant 0 : i32
    %c0_i32_0 = arith.constant 0 : i32
    %c0_i32_1 = arith.constant 0 : i32
    %c0_i32_2 = arith.constant 0 : i32
    return %c0_i32, %c0_i32_0, %c0_i32_1 : i32, i32, i32
  }
  func.func @transform_4(%arg0: i32) -> (i32, i32, i32) {
    %c0_i32 = arith.constant 0 : i32
    %c0_i32_0 = arith.constant 0 : i32
    %c0_i32_1 = arith.constant 0 : i32
    %c0_i32_2 = arith.constant 0 : i32
    return %c0_i32, %c0_i32_0, %c0_i32_1 : i32, i32, i32
  }
  func.func @transform_5(%arg0: i32) -> (i32, i32) {
    %c0_i32 = arith.constant 0 : i32
    %c0_i32_0 = arith.constant 0 : i32
    return %c0_i32, %arg0 : i32, i32
  }
}

</mosaic_0001>

<bundles_post_ra>
// kernel: attention_pallas.1
= control target key start
LH: loop header
LB: loop body
LE: loop exit
PB: predicated region body
PF: predicated region fallthrough
CT: control target
= control target key end

     0   :  { %s4536_s18 = smov 0   ;;  %s5846_s0 = inlined_call_operand.vmem [shape: f32[2,4,256], index: 0, kind: input, shape index: {}]   ;;  %s5847_s1 = inlined_call_operand.vmem [shape: f32[2,1024], index: 1, kind: input, shape index: {}]   ;;  %s5848_s2 = inlined_call_operand.vmem [shape: f32[3,4,4], index: 2, kind: input, shape index: {}]   ;;  %s5849_s3 = inlined_call_operand.vmem [shape: f32[3,4,1], index: 3, kind: input, shape index: {}]   ;;  %s5850_s4 = inlined_call_operand.vmem [shape: f32[4,128,512], index: 4, kind: input, shape index: {}]   ;;  %s5851_s5 = inlined_call_operand.vmem [shape: f32[2,1024], index: 5, kind: output, shape index: {}]  }
   0x1 LB: > { %s3243_s19 = sadd.s32 4294967295, %s4499_s18   ;;  %p3247_p0 = scmp.ge.s32.totalorder %s4499_s18, 1  ;;  %s4499_s18 = sphi %s4536_s18, %s15_s18  }
   0x2   : > { %p188_p1 = scmp.lt.s32.totalorder %s4499_s18, 3 }
   0x4   : > { %p189_p2 = pnand %p3247_p0, %p188_p1 }
   0x5   : > { %vm245_vm0 = vcmask (!%p189_p2), 1043456   ;;  %v396_v0 = vld [vmem:[%s5846_s0] sm:$0xf] (!%p189_p2)  ;;  %vm241_vm1 = vcmask (!%p189_p2), 31744   ;;  %v4501_v1 = vmov (!%p189_p2), 0.0   ;;  %vm4502_vm2 = vmmov (!%p189_p2), 0  }
   0x6   : > { %192 = sbr.rel (%p189_p2) target bundleno = 1612 (0x64c), region = 40  ;;  %3716 = vmatprep.subr.mxu1 (!%p189_p2), %v4501_v1  ;;  %3718 = vmatprep.mubr.msk.f32.mxu1 (!%p189_p2), %vm4502_vm2, %v4501_v1  ;;  %v4553_v2 = vld [vmem:[%s5848_s2 + $0x8] sm:$0xf] (!%p189_p2)  ;;  %s3252_s24 = sshll.u32 (!%p189_p2), %s3243_s19, 7  ;;  %v234_v4 = vld [vmem:[%s5848_s2] sm:$0xf] (!%p189_p2) }
   0x7   : > { %3717 = vmatpush3.msk.msra.mxu1 (!%p189_p2), %vm245_vm0, %v396_v0  ;;  %3701 = vmatprep.subr.mxu0 (!%p189_p2), %v4501_v1  ;;  %s229_s25 = sshra.s32 (!%p189_p2), %s3252_s24, 7  ;;  %v3285_v3 = vld [vmem:[%s5846_s0 + $0x8] sm:$0xf] (!%p189_p2)  ;;  %v4578_v5 = vld [vmem:[%s5848_s2 + $0x4] sm:$0xf] (!%p189_p2)  ;;  %v4503_v7 = vmov (!%p189_p2), 0  }
   0x8   : > { %3719 = vmatmul.mubr.msk.f32.vlgmr.msra.gmra.mrb[0].mxu1 (!%p189_p2), %vm241_vm1, %v4553_v2  ;;  %s3253_s28 = sshll.u32 (!%p189_p2), %s229_s25, 2  ;;  %3703 = vmatprep.mubr.msk.f32.mxu0 (!%p189_p2), %vm4502_vm2, %v4501_v1  ;;  %v235_v9 = vld [vmem:[%s5849_s3] sm:$0xf] (!%p189_p2)  ;;  %v3261_v10 = vld [vmem:[%s5849_s3 + $0x4] sm:$0xf] (!%p189_p2)  ;;  %vm2300_vm3 = vcmask (!%p189_p2), 1041409  }
   0x9   : > { %s232_s6 = scalar_lea.vmem (!%p189_p2), %s5846_s0, %s3253_s28  ;;  %3747 = vmatprep.subr.mxu1 (!%p189_p2), %v4501_v1  ;;  %3749 = vmatprep.mubr.msk.f32.mxu1 (!%p189_p2), %vm4502_vm2, %v4501_v1  ;;  %v3265_v11 = vld [vmem:[%s5849_s3 + $0x8] sm:$0xf] (!%p189_p2)  ;;  %v3307_v31 = vld [vmem:[%s5846_s0 + $0x4] sm:$0xf] (!%p189_p2)  ;;  %v3329_v48 = vld [vmem:[%s5846_s0 + $0xc] sm:$0xf] (!%p189_p2) }
   0xa   : > { %v233_v6 = vld [vmem:[%s232_s6] sm:$0xf] (!%p189_p2)  ;;  %3748 = vmatpush3.msk.msra.mxu1 (!%p189_p2), %vm245_vm0, %v3285_v3  ;;  %4364 = vset.pattern.permute.xlu0 (!%p189_p2), %v4503_v7  ;;  %v3257_v8 = vld [vmem:[%s232_s6 + $0x8] sm:$0xf] (!%p189_p2)  ;;  %s3248_s29 = sshll.u32 (!%p189_p2), %s3243_s19, 2 }
   0xb   : > { %3702 = vmatpush3.msk.msra.mxu0 (!%p189_p2), %vm245_vm0, %v233_v6  ;;  %3752 = vmatprep.subr.mxu1 (!%p189_p2), %v4501_v1  ;;  %p217_p3 = scmp.lt.s32.totalorder (!%p189_p2), %s3248_s29, 7 }
   0xc   : > { %3704 = vmatmul.mubr.msk.f32.vlgmr.msra.gmra.mrb[0].mxu0 (!%p189_p2), %vm241_vm1, %v234_v4  ;;  %3750 = vmatmul.mubr.msk.f32.vlgmr.msra.gmra.mrb[2].mxu1 (!%p189_p2), %vm241_vm1, %v4578_v5 }
   0xd   : > { %3706 = vmatprep.subr.mxu0 %v4501_v1  ;;  %3708 = vmatprep.mubr.msk.f32.mxu0 %vm4502_vm2, %v4501_v1  ;;  %s5860_s29 = smov (!%p217_p3, %s3248_s29), 7 }
   0xe   : > { %3707 = vmatpush3.msk.msra.mxu0 %vm245_vm0, %v3257_v8  ;;  %3753 = vmatpush3.msk.msra.mxu1 %vm245_vm0, %v3285_v3  ;;  %s3249_s30 = sshll.u32 %s5860_s29, 1 }
   0xf   : > { %3754 = vmatprep.mubr.msk.f32.mxu1 %vm4502_vm2, %v4501_v1  ;;  %3711 = vmatprep.subr.mxu0 %v4501_v1  ;;  %s220_s8 = scalar_lea.vmem %s5847_s1, %s3249_s30  ;;  %s226_s10 = scalar_lea.vmem %s5851_s5, %s3249_s30 }
  0x10   : > { %3709 = vmatmul.mubr.msk.f32.vlgmr.msra.gmra.mrb[2].mxu0 %vm241_vm1, %v234_v4  ;;  %3755 = vmatmul.mubr.msk.f32.vlgmr.msra.gmra.mrb[4].mxu1 %vm241_vm1, %v4553_v2 }
  0x11   : > { %3712 = vmatpush3.msk.msra.mxu0 %vm245_vm0, %v396_v0  ;;  %3713 = vmatprep.mubr.msk.f32.mxu0 %vm4502_vm2, %v4501_v1 }
  0x12   : > { %238 = vperm.xlu0 %4364, %v235_v9  }
  0x14   : > { %3714 = vmatmul.mubr.msk.f32.vlgmr.msra.gmra.mrb[4].mxu0 %vm241_vm1, %v4578_v5 }
  0x16   : > { %403 = vperm.xlu0 %4364, %v3261_v10  }
  0x1a   : > { %488 = vperm.xlu0 %4364, %v3265_v11  }
  0x91   : > { %v239_v12 = vpop.permute.xlu0 %238 }
  0x95   : > { %v4613_v15 = vpop.permute.xlu0 %403 }
  0xdb   : > { %v4611_v13 = vpop.f32.mrb[0].mxu1 }
  0xdc   : > { %v3720_v14 = vpop.f32.mrb[1].mxu1 }
  0xdf   : > { %v315_v16 = vpop.f32.mrb[0].mxu0  ;;  %v865_v17 = vpop.f32.mrb[2].mxu1 }
  0xe0   : > { %v3705_v18 = vpop.f32.mrb[1].mxu0  ;;  %v866_v19 = vadd.f32 %v865_v17, %v4613_v15  ;;  %v316_v20 = vadd.f32 %v315_v16, %v239_v12  ;;  %v3751_v21 = vpop.f32.mrb[3].mxu1 }
  0xe2   : > { %564 = vxpose.xlu1.b32.start.end [1/1] (short) %v316_v20, 128  ;;  %3757 = vmatprep.subr.msk.mxu1 %vm245_vm0, %v866_v19 }
  0xe3   : > { %v392_v22 = vpop.f32.mrb[2].mxu0  ;;  %v4617_v23 = vpop.f32.mrb[4].mxu1  ;;  %3758 = vmatpush3.msk.msra.mxu1 %vm245_vm0, %v866_v19 }
  0xe4   : > { %v393_v24 = vadd.f32 %v392_v22, %v239_v12  ;;  %v3710_v25 = vpop.f32.mrb[3].mxu0  ;;  %3819 = vmatprep.subr.mxu1 %v4501_v1  ;;  %v3756_v26 = vpop.f32.mrb[5].mxu1 }
  0xe7   : > { %v478_v27 = vpop.f32.mrb[4].mxu0 }
  0xe8   : > { %v479_v28 = vadd.f32 %v478_v27, %v4613_v15  ;;  %v3715_v29 = vpop.f32.mrb[5].mxu0 }
  0xea   : > { %3721 = vmatprep.subr.msk.mxu0 %vm245_vm0, %v479_v28 }
  0xeb   : > { %3722 = vmatpush3.msk.msra.mxu0 %vm245_vm0, %v479_v28 }
  0xec   : > { %3783 = vmatprep.subr.mxu0 %v4501_v1 }
 0x11f   : > { %939 = vxpose.xlu1.b32.start.end [1/1] (short) %v393_v24, 128 }
 0x162   : > { %v580_v30 = vpop.trf.xlu1 }
 0x163   : > { %3723 = vmatprep.mubr.msk.f32.mxu0 %vm241_vm1, %v580_v30 }
 0x166   : > { %v4629_v32 = vpop.trf.xlu1 }
 0x167   : > { %3724 = vmatmul.mubr.msk.f32.vlgmr.msra.gmra.mrb[6].mxu0 %vm241_vm1, %v4629_v32 }
 0x168   : > { %3784 = vmatpush3.msk.msra.mxu0 %vm245_vm0, %v3307_v31 }
 0x169   : > { %3788 = vmatprep.subr.mxu0 %v4501_v1 }
 0x16a   : > { %v4635_v33 = vpop.trf.xlu1 }
 0x16b   : > { %3726 = vmatprep.mubr.msk.f32.mxu0 %vm241_vm1, %v4635_v33 }
 0x16e   : > { %v4639_v34 = vpop.trf.xlu1 }
 0x16f   : > { %3727 = vmatmul.mubr.msk.f32.gmra.mrb[8].mxu0 %vm241_vm1, %v4639_v34 }
 0x172   : > { %v4643_v35 = vpop.trf.xlu1 }
 0x173   : > { %3729 = vmatprep.mubr.msk.f32.mxu0 %vm241_vm1, %v4643_v35 }
 0x176   : > { %v4647_v36 = vpop.trf.xlu1 }
 0x177   : > { %3730 = vmatmul.mubr.msk.f32.gmra.mrb[10].mxu0 %vm241_vm1, %v4647_v36 }
 0x17a   : > { %v4651_v37 = vpop.trf.xlu1 }
 0x17b   : > { %3732 = vmatprep.mubr.msk.f32.mxu0 %vm241_vm1, %v4651_v37 }
 0x17e   : > { %v4655_v38 = vpop.trf.xlu1 }
 0x17f   : > { %3733 = vmatmul.mubr.msk.f32.gmra.mrb[12].mxu0 %vm241_vm1, %v4655_v38 }
 0x182   : > { %v4659_v39 = vpop.trf.xlu1 }
 0x183   : > { %3735 = vmatprep.mubr.msk.f32.mxu0 %vm241_vm1, %v4659_v39 }
 0x186   : > { %v4663_v40 = vpop.trf.xlu1 }
 0x187   : > { %3736 = vmatmul.mubr.msk.f32.gmra.mrb[14].mxu0 %vm241_vm1, %v4663_v40 }
 0x18a   : > { %v4667_v41 = vpop.trf.xlu1 }
 0x18b   : > { %3738 = vmatprep.mubr.msk.f32.mxu0 %vm241_vm1, %v4667_v41 }
 0x18e   : > { %v4671_v42 = vpop.trf.xlu1 }
 0x18f   : > { %3739 = vmatmul.mubr.msk.f32.gmra.mrb[16].mxu0 %vm241_vm1, %v4671_v42 }
 0x192   : > { %v4675_v43 = vpop.trf.xlu1 }
 0x193   : > { %3741 = vmatprep.mubr.msk.f32.mxu0 %vm241_vm1, %v4675_v43 }
 0x196   : > { %v4679_v44 = vpop.trf.xlu1 }
 0x197   : > { %3742 = vmatmul.mubr.msk.f32.gmra.mrb[18].mxu0 %vm241_vm1, %v4679_v44 }
 0x19a   : > { %v4683_v45 = vpop.trf.xlu1 }
 0x19b   : > { %3744 = vmatprep.mubr.msk.f32.mxu0 %vm241_vm1, %v4683_v45 }
 0x19e   : > { %v4687_v46 = vpop.trf.xlu1 }
 0x19f   : > { %3745 = vmatmul.mubr.msk.f32.gmra.mrb[20].mxu0 %vm241_vm1, %v4687_v46 }
 0x1a0   : > { %3785 = vmatprep.mubr.msk.f32.mxu0 %vm4502_vm2, %v4501_v1 }
 0x1a2   : > { %v955_v47 = vpop.trf.xlu1 }
 0x1a3   : > { %3759 = vmatprep.mubr.msk.f32.mxu1 %vm241_vm1, %v955_v47  ;;  %3786 = vmatmul.mubr.msk.f32.vlgmr.msra.gmra.mrb[22].mxu0 %vm241_vm1, %v4578_v5 }
 0x1a4   : > { %3789 = vmatpush3.msk.msra.mxu0 %vm245_vm0, %v3307_v31  ;;  %3790 = vmatprep.mubr.msk.f32.mxu0 %vm4502_vm2, %v4501_v1 }
 0x1a6   : > { %v4702_v49 = vpop.trf.xlu1 }
 0x1a7   : > { %3760 = vmatmul.mubr.msk.f32.vlgmr.msra.gmra.mrb[6].mxu1 %vm241_vm1, %v4702_v49  ;;  %3791 = vmatmul.mubr.msk.f32.vlgmr.msra.gmra.mrb[24].mxu0 %vm241_vm1, %v4553_v2 }
 0x1a8   : > { %3795 = vmatprep.mubr.msk.f32.mxu0 %vm241_vm1, %v580_v30  ;;  %3820 = vmatpush3.msk.msra.mxu1 %vm245_vm0, %v3329_v48 }
 0x1a9   : > { %3824 = vmatprep.subr.mxu1 %v4501_v1 }
 0x1aa   : > { %v4711_v50 = vpop.trf.xlu1 }
 0x1ab   : > { %3762 = vmatprep.mubr.msk.f32.mxu1 %vm241_vm1, %v4711_v50 }
 0x1ae   : > { %v4715_v51 = vpop.trf.xlu1 }
 0x1af   : > { %3763 = vmatmul.mubr.msk.f32.gmra.mrb[8].mxu1 %vm241_vm1, %v4715_v51 }
 0x1b2   : > { %v4719_v52 = vpop.trf.xlu1 }
 0x1b3   : > { %3765 = vmatprep.mubr.msk.f32.mxu1 %vm241_vm1, %v4719_v52 }
 0x1b6   : > { %v4723_v53 = vpop.trf.xlu1 }
 0x1b7   : > { %3766 = vmatmul.mubr.msk.f32.gmra.mrb[10].mxu1 %vm241_vm1, %v4723_v53 }
 0x1ba   : > { %v4727_v54 = vpop.trf.xlu1 }
 0x1bb   : > { %3768 = vmatprep.mubr.msk.f32.mxu1 %vm241_vm1, %v4727_v54 }
 0x1be   : > { %v4731_v55 = vpop.trf.xlu1 }
 0x1bf   : > { %3769 = vmatmul.mubr.msk.f32.gmra.mrb[12].mxu1 %vm241_vm1, %v4731_v55 }
 0x1c2   : > { %v4735_v56 = vpop.trf.xlu1 }
 0x1c3   : > { %3771 = vmatprep.mubr.msk.f32.mxu1 %vm241_vm1, %v4735_v56 }
 0x1c6   : > { %v4739_v57 = vpop.trf.xlu1 }
 0x1c7   : > { %3772 = vmatmul.mubr.msk.f32.gmra.mrb[14].mxu1 %vm241_vm1, %v4739_v57 }
 0x1ca   : > { %v4743_v58 = vpop.trf.xlu1 }
 0x1cb   : > { %3774 = vmatprep.mubr.msk.f32.mxu1 %vm241_vm1, %v4743_v58 }
 0x1ce   : > { %v4747_v59 = vpop.trf.xlu1 }
 0x1cf   : > { %3775 = vmatmul.mubr.msk.f32.gmra.mrb[16].mxu1 %vm241_vm1, %v4747_v59 }
 0x1d2   : > { %v4751_v60 = vpop.trf.xlu1 }
 0x1d3   : > { %3777 = vmatprep.mubr.msk.f32.mxu1 %vm241_vm1, %v4751_v60 }
 0x1d6   : > { %v4755_v61 = vpop.trf.xlu1 }
 0x1d7   : > { %3778 = vmatmul.mubr.msk.f32.gmra.mrb[18].mxu1 %vm241_vm1, %v4755_v61 }
 0x1da   : > { %v4759_v62 = vpop.trf.xlu1 }
 0x1db   : > { %3780 = vmatprep.mubr.msk.f32.mxu1 %vm241_vm1, %v4759_v62 }
 0x1de   : > { %v4763_v63 = vpop.trf.xlu1 }
 0x1df   : > { %3781 = vmatmul.mubr.msk.f32.gmra.mrb[20].mxu1 %vm241_vm1, %v4763_v63 }
 0x1e0   : > { %3821 = vmatprep.mubr.msk.f32.mxu1 %vm4502_vm2, %v4501_v1 }
 0x1e3   : > { %3822 = vmatmul.mubr.msk.f32.vlgmr.msra.gmra.mrb[22].mxu1 %vm241_vm1, %v4578_v5 }
 0x1e4   : > { %3825 = vmatpush3.msk.msra.mxu1 %vm245_vm0, %v3329_v48  ;;  %3826 = vmatprep.mubr.msk.f32.mxu1 %vm4502_vm2, %v4501_v1 }
 0x1e7   : > { %3827 = vmatmul.mubr.msk.f32.vlgmr.msra.gmra.mrb[24].mxu1 %vm241_vm1, %v4553_v2 }
 0x1e8   : > { %3831 = vmatprep.mubr.msk.f32.mxu1 %vm241_vm1, %v955_v47 }
 0x23a   : > { %v3725_v0 = vpop.f32.mrb[6].mxu0 }
 0x23b   : > { %v713_v3 = vpop.f32.mrb[7].mxu0 }
 0x242   : > { %v3728_v4 = vpop.f32.mrb[8].mxu0 }
 0x243   : > { %v723_v6 = vpop.f32.mrb[9].mxu0 }
 0x24a   : > { %v3731_v7 = vpop.f32.mrb[10].mxu0 }
 0x24b   : > { %v733_v8 = vpop.f32.mrb[11].mxu0 }
 0x252   : > { %v4777_v9 = vpop.f32.mrb[12].mxu0 }
 0x253   : > { %v4779_v10 = vpop.f32.mrb[13].mxu0 }
 0x25a   : > { %v4781_v5 = vpop.f32.mrb[14].mxu0 }
 0x25b   : > { %v4783_v11 = vpop.f32.mrb[15].mxu0 }
 0x262   : > { %v4785_v12 = vpop.f32.mrb[16].mxu0 }
 0x263   : > { %v4787_v14 = vpop.f32.mrb[17].mxu0 }
 0x26a   : > { %v4789_v2 = vpop.f32.mrb[18].mxu0 }
 0x26b   : > { %v4791_v16 = vpop.f32.mrb[19].mxu0 }
 0x272   : > { %v4793_v17 = vpop.f32.mrb[20].mxu0 }
 0x273   : > { %v4795_v18 = vpop.f32.mrb[21].mxu0 }
 0x276   : > { %v1334_v19 = vpop.f32.mrb[22].mxu0 }
 0x277   : > { %v1335_v20 = vadd.f32 %v1334_v19, %v4613_v15  ;;  %v3787_v21 = vpop.f32.mrb[23].mxu0 }
 0x279   : > { %3793 = vmatprep.subr.msk.mxu0 %vm245_vm0, %v1335_v20 }
 0x27a   : > { %v3761_v22 = vpop.f32.mrb[6].mxu1  ;;  %v4799_v24 = vpop.f32.mrb[24].mxu0  ;;  %3794 = vmatpush3.msk.msra.mxu0 %vm245_vm0, %v1335_v20 }
 0x27b   : > { %v1168_v25 = vsub.f32 %v3761_v22, %v3725_v0  ;;  %v1088_v26 = vpop.f32.mrb[7].mxu1  ;;  %3796 = vmatmul.mubr.msk.f32.vlgmr.msra.gmra.mrb[26].mxu0 %vm241_vm1, %v4629_v32  ;;  %v3792_v27 = vpop.f32.mrb[25].mxu0 }
 0x27c   : > { %v1167_v28 = vsub.f32 %v1088_v26, %v713_v3  ;;  %3798 = vmatprep.mubr.msk.f32.mxu0 %vm241_vm1, %v4635_v33 }
 0x27d   : > { %v1185_v29 = vmul.f32 1.442695, %v1168_v25 }
 0x27e   : > { %v1183_v30 = vmul.f32 1.442695, %v1167_v28 }
 0x27f   : > { %4365 = vpow2.f32 %v1185_v29  ;;  %3799 = vmatmul.mubr.msk.f32.gmra.mrb[28].mxu0 %vm241_vm1, %v4639_v34 }
 0x280   : > { %4367 = vpow2.f32 %v1183_v30  ;;  %3801 = vmatprep.mubr.msk.f32.mxu0 %vm241_vm1, %v4643_v35 }
 0x282   : > { %v3764_v31 = vpop.f32.mrb[8].mxu1 }
 0x283   : > { %v1170_v47 = vsub.f32 %v3764_v31, %v3728_v4  ;;  %v1098_v48 = vpop.f32.mrb[9].mxu1  ;;  %3802 = vmatmul.mubr.msk.f32.gmra.mrb[30].mxu0 %vm241_vm1, %v4647_v36 }
 0x284   : > { %v1169_v32 = vsub.f32 %v1098_v48, %v723_v6  ;;  %3804 = vmatprep.mubr.msk.f32.mxu0 %vm241_vm1, %v4651_v37 }
 0x285   : > { %v1189_v33 = vmul.f32 1.442695, %v1170_v47 }
 0x286   : > { %v1187_v0 = vmul.f32 1.442695, %v1169_v32 }
 0x287   : > { %4369 = vpow2.f32 %v1189_v33  ;;  %3805 = vmatmul.mubr.msk.f32.gmra.mrb[32].mxu0 %vm241_vm1, %v4655_v38 }
 0x288   : > { %4371 = vpow2.f32 %v1187_v0  ;;  %3807 = vmatprep.mubr.msk.f32.mxu0 %vm241_vm1, %v4659_v39 }
 0x289   : > { %v4366_v34 = vpop.eup %4365 }
 0x28a   : > { %v4368_v35 = vpop.eup %4367  ;;  %v1216_v3 = vadd.f32 1.0, %v4366_v34  ;;  %v3767_v4 = vpop.f32.mrb[10].mxu1 }
 0x28b   : > { %v1215_v19 = vadd.f32 1.0, %v4368_v35  ;;  %v1172_v36 = vsub.f32 %v3767_v4, %v3731_v7  ;;  %v1108_v6 = vpop.f32.mrb[11].mxu1  ;;  %3808 = vmatmul.mubr.msk.f32.gmra.mrb[34].mxu0 %vm241_vm1, %v4663_v40 }
 0x28c   : > { %4373 = vrcp.f32 %v1216_v3  ;;  %v1171_v37 = vsub.f32 %v1108_v6, %v733_v8  ;;  %3810 = vmatprep.mubr.msk.f32.mxu0 %vm241_vm1, %v4667_v41 }
 0x28d   : > { %4375 = vrcp.f32 %v1215_v19  ;;  %v1193_v38 = vmul.f32 1.442695, %v1172_v36 }
 0x28e   : > { %v1191_v20 = vmul.f32 1.442695, %v1171_v37 }
 0x28f   : > { %4377 = vpow2.f32 %v1193_v38  ;;  %3811 = vmatmul.mubr.msk.f32.gmra.mrb[36].mxu0 %vm241_vm1, %v4671_v42 }
 0x290   : > { %4379 = vpow2.f32 %v1191_v20  ;;  %3813 = vmatprep.mubr.msk.f32.mxu0 %vm241_vm1, %v4675_v43 }
 0x291   : > { %v4370_v39 = vpop.eup %4369 }
 0x292   : > { %v4372_v7 = vpop.eup %4371  ;;  %v1218_v21 = vadd.f32 1.0, %v4370_v39  ;;  %v3770_v40 = vpop.f32.mrb[12].mxu1 }
 0x293   : > { %v1217_v22 = vadd.f32 1.0, %v4372_v7  ;;  %v1174_v8 = vsub.f32 %v3770_v40, %v4777_v9  ;;  %v1118_v25 = vpop.f32.mrb[13].mxu1  ;;  %3814 = vmatmul.mubr.msk.f32.gmra.mrb[38].mxu0 %vm241_vm1, %v4679_v44 }
 0x294   : > { %4381 = vrcp.f32 %v1218_v21  ;;  %v1173_v41 = vsub.f32 %v1118_v25, %v4779_v10  ;;  %3816 = vmatprep.mubr.msk.f32.mxu0 %vm241_vm1, %v4683_v45 }
 0x295   : > { %4383 = vrcp.f32 %v1217_v22  ;;  %v1197_v42 = vmul.f32 1.442695, %v1174_v8 }
 0x296   : > { %v4832_v43 = vpop.eup %4373  ;;  %v1195_v26 = vmul.f32 1.442695, %v1173_v41 }
 0x297   : > { %v4834_v27 = vpop.eup %4375  ;;  %4385 = vpow2.f32 %v1197_v42  ;;  %3817 = vmatmul.mubr.msk.f32.gmra.mrb[40].mxu0 %vm241_vm1, %v4687_v46  ;;  %v1248_v9 = vsub.f32 1.0, %v4832_v43 }
 0x298   : > { %4387 = vpow2.f32 %v1195_v26  ;;  %3887 = vmatprep.mubr.msk.f32.mxu0 %vm4502_vm2, %v4501_v1  ;;  %v4020_v44 = vpack.c.bf16 %v4832_v43, %v4834_v27  ;;  %v1247_v45 = vsub.f32 1.0, %v4834_v27 }
 0x299   : > { %v4378_v10 = vpop.eup %4377 }
 0x29a   : > { %v4380_v28 = vpop.eup %4379  ;;  %v1220_v29 = vadd.f32 1.0, %v4378_v10  ;;  %v3773_v30 = vpop.f32.mrb[14].mxu1  ;;  %v4844_v31 = vpack.c.bf16 %v1248_v9, %v1247_v45 }
 0x29b   : > { %v1219_v47 = vadd.f32 1.0, %v4380_v28  ;;  %v1176_v46 = vsub.f32 %v3773_v30, %v4781_v5  ;;  %v1128_v48 = vpop.f32.mrb[15].mxu1 }
 0x29c   : > { %4389 = vrcp.f32 %v1220_v29  ;;  %v1175_v32 = vsub.f32 %v1128_v48, %v4783_v11 }
 0x29d   : > { %4391 = vrcp.f32 %v1219_v47  ;;  %v1201_v33 = vmul.f32 1.442695, %v1176_v46 }
 0x29e   : > { %v4848_v0 = vpop.eup %4381  ;;  %v1199_v34 = vmul.f32 1.442695, %v1175_v32 }
 0x29f   : > { %v4850_v35 = vpop.eup %4383  ;;  %4393 = vpow2.f32 %v1201_v33  ;;  %v1250_v3 = vsub.f32 1.0, %v4848_v0 }
 0x2a0   : > { %4395 = vpow2.f32 %v1199_v34  ;;  %v1249_v5 = vsub.f32 1.0, %v4850_v35 }
 0x2a1   : > { %v4386_v19 = vpop.eup %4385 }
 0x2a2   : > { %v4388_v36 = vpop.eup %4387  ;;  %v1222_v6 = vadd.f32 1.0, %v4386_v19  ;;  %v3776_v11 = vpop.f32.mrb[16].mxu1  ;;  %v4856_v37 = vpack.c.bf16 %v1250_v3, %v1249_v5 }
 0x2a3   : > { %v1221_v38 = vadd.f32 1.0, %v4388_v36  ;;  %v1178_v20 = vsub.f32 %v3776_v11, %v4785_v12  ;;  %v1138_v39 = vpop.f32.mrb[17].mxu1 }
 0x2a4   : > { %4397 = vrcp.f32 %v1222_v6  ;;  %v1177_v7 = vsub.f32 %v1138_v39, %v4787_v14 }
 0x2a5   : > { %4399 = vrcp.f32 %v1221_v38  ;;  %v1205_v21 = vmul.f32 1.442695, %v1178_v20 }
 0x2a6   : > { %v4860_v40 = vpop.eup %4389  ;;  %v1203_v22 = vmul.f32 1.442695, %v1177_v7 }
 0x2a7   : > { %v4862_v8 = vpop.eup %4391  ;;  %4401 = vpow2.f32 %v1205_v21  ;;  %v1252_v25 = vsub.f32 1.0, %v4860_v40 }
 0x2a8   : > { %4403 = vpow2.f32 %v1203_v22  ;;  %v1251_v12 = vsub.f32 1.0, %v4862_v8  ;;  %v5853_v43 = vpack.c.bf16 %v4860_v40, %v4862_v8  ;;  %v2236_v40 = vld [vmem:[%s5850_s4 + $0x18] sm:$0xff] }
 0x2a9   : > { %v4394_v42 = vpop.eup %4393  ;;  %v2240_v8 = vld [vmem:[%s5850_s4 + $0x38] sm:$0xff] }
 0x2aa   : > { %v4396_v26 = vpop.eup %4395  ;;  %v1224_v9 = vadd.f32 1.0, %v4394_v42  ;;  %v3779_v14 = vpop.f32.mrb[18].mxu1  ;;  %v4868_v45 = vpack.c.bf16 %v1252_v25, %v1251_v12 }
 0x2ab   : > { %v1223_v10 = vadd.f32 1.0, %v4396_v26  ;;  %v1180_v28 = vsub.f32 %v3779_v14, %v4789_v2  ;;  %v1148_v29 = vpop.f32.mrb[19].mxu1 }
 0x2ac   : > { %4405 = vrcp.f32 %v1224_v9  ;;  %v1179_v30 = vsub.f32 %v1148_v29, %v4791_v16 }
 0x2ad   : > { %4407 = vrcp.f32 %v1223_v10  ;;  %v1209_v47 = vmul.f32 1.442695, %v1180_v28 }
 0x2ae   : > { %v4872_v46 = vpop.eup %4397  ;;  %v1207_v48 = vmul.f32 1.442695, %v1179_v30 }
 0x2af   : > { %v4874_v32 = vpop.eup %4399  ;;  %4409 = vpow2.f32 %v1209_v47  ;;  %v1254_v33 = vsub.f32 1.0, %v4872_v46 }
 0x2b0   : > { %4411 = vpow2.f32 %v1207_v48  ;;  %v1253_v2 = vsub.f32 1.0, %v4874_v32  ;;  %v5854_v27 = vpack.c.bf16 %v4872_v46, %v4874_v32  ;;  %v4123_v46 = vpack.c.bf16 %v2240_v8, %v2236_v40  ;;  %v2276_v40 = vld [vmem:[%s5850_s4 + $0x158] sm:$0xff] }
 0x2b1   : > { %v4402_v3 = vpop.eup %4401 }
 0x2b2   : > { %v4404_v5 = vpop.eup %4403  ;;  %v1226_v19 = vadd.f32 1.0, %v4402_v3  ;;  %v3782_v16 = vpop.f32.mrb[20].mxu1  ;;  %v4880_v36 = vpack.c.bf16 %v1254_v33, %v1253_v2 }
 0x2b3   : > { %v1225_v6 = vadd.f32 1.0, %v4404_v5  ;;  %v1182_v11 = vsub.f32 %v3782_v16, %v4793_v17  ;;  %v1158_v38 = vpop.f32.mrb[21].mxu1 }
 0x2b4   : > { %4413 = vrcp.f32 %v1226_v19  ;;  %v1181_v20 = vsub.f32 %v1158_v38, %v4795_v18 }
 0x2b5   : > { %4415 = vrcp.f32 %v1225_v6  ;;  %v1213_v39 = vmul.f32 1.442695, %v1182_v11 }
 0x2b6   : > { %v4884_v7 = vpop.eup %4405  ;;  %v1211_v21 = vmul.f32 1.442695, %v1181_v20  ;;  %v1629_v22 = vpop.f32.mrb[22].mxu1 }
 0x2b7   : > { %v4886_v25 = vpop.eup %4407  ;;  %4417 = vpow2.f32 %v1213_v39  ;;  %v1630_v12 = vadd.f32 %v1629_v22, %v4613_v15  ;;  %v3823_v42 = vpop.f32.mrb[23].mxu1  ;;  %v1256_v26 = vsub.f32 1.0, %v4884_v7 }
 0x2b8   : > { %4419 = vpow2.f32 %v1211_v21  ;;  %v1255_v18 = vsub.f32 1.0, %v4886_v25 }
 0x2b9   : > { %v4410_v9 = vpop.eup %4409  ;;  %3829 = vmatprep.subr.msk.mxu1 %vm245_vm0, %v1630_v12 }
 0x2ba   : > { %v4412_v14 = vpop.eup %4411  ;;  %v1228_v10 = vadd.f32 1.0, %v4410_v9  ;;  %v4894_v28 = vpop.f32.mrb[24].mxu1  ;;  %3830 = vmatpush3.msk.msra.mxu1 %vm245_vm0, %v1630_v12  ;;  %v4897_v29 = vpack.c.bf16 %v1256_v26, %v1255_v18 }
 0x2bb   : > { %v1227_v15 = vadd.f32 1.0, %v4412_v14  ;;  %3832 = vmatmul.mubr.msk.f32.vlgmr.msra.gmra.mrb[26].mxu1 %vm241_vm1, %v4702_v49  ;;  %v3828_v30 = vpop.f32.mrb[25].mxu1 }
 0x2bc   : > { %4421 = vrcp.f32 %v1228_v10  ;;  %3834 = vmatprep.mubr.msk.f32.mxu1 %vm241_vm1, %v4711_v50 }
 0x2bd   : > { %4423 = vrcp.f32 %v1227_v15 }
 0x2be   : > { %v4903_v47 = vpop.eup %4413 }
 0x2bf   : > { %v4905_v48 = vpop.eup %4415  ;;  %3835 = vmatmul.mubr.msk.f32.gmra.mrb[28].mxu1 %vm241_vm1, %v4715_v51  ;;  %v1258_v33 = vsub.f32 1.0, %v4903_v47 }
 0x2c0   : > { %3837 = vmatprep.mubr.msk.f32.mxu1 %vm241_vm1, %v4719_v52  ;;  %v1257_v2 = vsub.f32 1.0, %v4905_v48 }
 0x2c1   : > { %v4418_v3 = vpop.eup %4417 }
 0x2c2   : > { %v4420_v50 = vpop.eup %4419  ;;  %v1230_v5 = vadd.f32 1.0, %v4418_v3  ;;  %v4915_v19 = vpack.c.bf16 %v1258_v33, %v1257_v2 }
 0x2c3   : > { %v1229_v16 = vadd.f32 1.0, %v4420_v50  ;;  %3838 = vmatmul.mubr.msk.f32.gmra.mrb[30].mxu1 %vm241_vm1, %v4723_v53 }
 0x2c4   : > { %4425 = vrcp.f32 %v1230_v5  ;;  %3840 = vmatprep.mubr.msk.f32.mxu1 %vm241_vm1, %v4727_v54 }
 0x2c5   : > { %4427 = vrcp.f32 %v1229_v16 }
 0x2c6   : > { %v4921_v51 = vpop.eup %4421 }
 0x2c7   : > { %v4923_v52 = vpop.eup %4423  ;;  %3841 = vmatmul.mubr.msk.f32.gmra.mrb[32].mxu1 %vm241_vm1, %v4731_v55  ;;  %v1260_v6 = vsub.f32 1.0, %v4921_v51 }
 0x2c8   : > { %3843 = vmatprep.mubr.msk.f32.mxu1 %vm241_vm1, %v4735_v56  ;;  %v1259_v11 = vsub.f32 1.0, %v4923_v52 }
 0x2ca   : > { %v4933_v38 = vpack.c.bf16 %v1260_v6, %v1259_v11 }
 0x2cb   : > { %3844 = vmatmul.mubr.msk.f32.gmra.mrb[34].mxu1 %vm241_vm1, %v4739_v57 }
 0x2cc   : > { %3846 = vmatprep.mubr.msk.f32.mxu1 %vm241_vm1, %v4743_v58  ;;  %v4504_v58 = vmov 0.0|0.0  }
 0x2cd   : > { %3995 = vmatprep.subr.bf16.mxu0 %v4504_v58  ;;  %4043 = vmatprep.subr.bf16.mxu1 %v4504_v58 }
 0x2ce   : > { %v4939_v54 = vpop.eup %4425 }
 0x2cf   : > { %v4941_v55 = vpop.eup %4427  ;;  %3847 = vmatmul.mubr.msk.f32.gmra.mrb[36].mxu1 %vm241_vm1, %v4747_v59  ;;  %v1262_v56 = vsub.f32 1.0, %v4939_v54 }
 0x2d0   : > { %3849 = vmatprep.mubr.msk.f32.mxu1 %vm241_vm1, %v4751_v60  ;;  %v1261_v57 = vsub.f32 1.0, %v4941_v55  ;;  %v5858_v32 = vpack.c.bf16 %v4939_v54, %v4941_v55  ;;  %v2241_v54 = vld [vmem:[%s5850_s4 + $0x40] sm:$0xff] }
 0x2d1   : > { %v2245_v55 = vld [vmem:[%s5850_s4 + $0x60] sm:$0xff] }
 0x2d2   : > { %v4951_v39 = vpack.c.bf16 %v1262_v56, %v1261_v57 }
 0x2d3   : > { %3850 = vmatmul.mubr.msk.f32.gmra.mrb[38].mxu1 %vm241_vm1, %v4755_v61 }
 0x2d4   : > { %3852 = vmatprep.mubr.msk.f32.mxu1 %vm241_vm1, %v4759_v62 }
 0x2d7   : > { %3853 = vmatmul.mubr.msk.f32.gmra.mrb[40].mxu1 %vm241_vm1, %v4763_v63 }
 0x2d8   : > { %3957 = vmatprep.mubr.msk.f32.mxu1 %vm4502_vm2, %v4501_v1 }
 0x34e   : > { %v3797_v59 = vpop.f32.mrb[26].mxu0 }
 0x34f   : > { %v1477_v60 = vpop.f32.mrb[27].mxu0 }
 0x352   : > { %v3800_v21 = vpop.f32.mrb[28].mxu0 }
 0x353   : > { %v1487_v22 = vpop.f32.mrb[29].mxu0 }
 0x356   : > { %v3803_v12 = vpop.f32.mrb[30].mxu0 }
 0x357   : > { %v1497_v61 = vpop.f32.mrb[31].mxu0 }
 0x35a   : > { %v3806_v42 = vpop.f32.mrb[32].mxu0 }
 0x35b   : > { %v1507_v26 = vpop.f32.mrb[33].mxu0 }
 0x35e   : > { %v3809_v62 = vpop.f32.mrb[34].mxu0 }
 0x35f   : > { %v1517_v18 = vpop.f32.mrb[35].mxu0 }
 0x362   : > { %v3812_v9 = vpop.f32.mrb[36].mxu0 }
 0x363   : > { %v4963_v63 = vpop.f32.mrb[37].mxu0 }
 0x366   : > { %v4965_v14 = vpop.f32.mrb[38].mxu0 }
 0x367   : > { %v4967_v10 = vpop.f32.mrb[39].mxu0 }
 0x36a   : > { %v4969_v15 = vpop.f32.mrb[40].mxu0 }
 0x36b   : > { %v4971_v30 = vpop.f32.mrb[41].mxu0 }
 0x38e   : > { %v3833_v33 = vpop.f32.mrb[26].mxu1 }
 0x38f   : > { %v1852_v2 = vsub.f32 %v3833_v33, %v3797_v59  ;;  %v1772_v3 = vpop.f32.mrb[27].mxu1 }
 0x390   : > { %v1851_v50 = vsub.f32 %v1772_v3, %v1477_v60 }
 0x391   : > { %v1869_v5 = vmul.f32 1.442695, %v1852_v2 }
 0x392   : > { %v1867_v16 = vmul.f32 1.442695, %v1851_v50  ;;  %v3836_v6 = vpop.f32.mrb[28].mxu1 }
 0x393   : > { %4429 = vpow2.f32 %v1869_v5  ;;  %v1854_v11 = vsub.f32 %v3836_v6, %v3800_v21  ;;  %v1782_v56 = vpop.f32.mrb[29].mxu1 }
 0x394   : > { %4431 = vpow2.f32 %v1867_v16  ;;  %v1853_v57 = vsub.f32 %v1782_v56, %v1487_v22 }
 0x395   : > { %v1873_v20 = vmul.f32 1.442695, %v1854_v11 }
 0x396   : > { %v1871_v53 = vmul.f32 1.442695, %v1853_v57  ;;  %v3839_v49 = vpop.f32.mrb[30].mxu1 }
 0x397   : > { %4433 = vpow2.f32 %v1873_v20  ;;  %v1856_v17 = vsub.f32 %v3839_v49, %v3803_v12  ;;  %v1792_v34 = vpop.f32.mrb[31].mxu1 }
 0x398   : > { %4435 = vpow2.f32 %v1871_v53  ;;  %v1855_v41 = vsub.f32 %v1792_v34, %v1497_v61 }
 0x399   : > { %v1877_v4 = vmul.f32 1.442695, %v1856_v17 }
 0x39a   : > { %v1875_v59 = vmul.f32 1.442695, %v1855_v41  ;;  %v3842_v33 = vpop.f32.mrb[32].mxu1 }
 0x39b   : > { %4437 = vpow2.f32 %v1877_v4  ;;  %v1858_v60 = vsub.f32 %v3842_v33, %v3806_v42  ;;  %v1802_v2 = vpop.f32.mrb[33].mxu1 }
 0x39c   : > { %4439 = vpow2.f32 %v1875_v59  ;;  %v1857_v3 = vsub.f32 %v1802_v2, %v1507_v26 }
 0x39d   : > { %v4430_v21 = vpop.eup %4429  ;;  %v1881_v50 = vmul.f32 1.442695, %v1858_v60 }
 0x39e   : > { %v4432_v5 = vpop.eup %4431  ;;  %v1900_v22 = vadd.f32 1.0, %v4430_v21  ;;  %v1879_v16 = vmul.f32 1.442695, %v1857_v3  ;;  %v3845_v6 = vpop.f32.mrb[34].mxu1 }
 0x39f   : > { %v1899_v11 = vadd.f32 1.0, %v4432_v5  ;;  %4441 = vpow2.f32 %v1881_v50  ;;  %v1860_v49 = vsub.f32 %v3845_v6, %v3809_v62  ;;  %v1812_v20 = vpop.f32.mrb[35].mxu1 }
 0x3a0   : > { %4443 = vrcp.f32 %v1900_v22  ;;  %v1859_v34 = vsub.f32 %v1812_v20, %v1517_v18 }
 0x3a1   : > { %v4434_v17 = vpop.eup %4433  ;;  %4445 = vrcp.f32 %v1899_v11  ;;  %v1885_v41 = vmul.f32 1.442695, %v1860_v49 }
 0x3a2   : > { %v4436_v4 = vpop.eup %4435  ;;  %v1902_v53 = vadd.f32 1.0, %v4434_v17  ;;  %4447 = vpow2.f32 %v1879_v16  ;;  %v1883_v12 = vmul.f32 1.442695, %v1859_v34  ;;  %v3848_v61 = vpop.f32.mrb[36].mxu1 }
 0x3a3   : > { %v1901_v42 = vadd.f32 1.0, %v4436_v4  ;;  %4449 = vpow2.f32 %v1885_v41  ;;  %v1862_v26 = vsub.f32 %v3848_v61, %v3812_v9  ;;  %v1822_v56 = vpop.f32.mrb[37].mxu1 }
 0x3a4   : > { %4451 = vrcp.f32 %v1902_v53  ;;  %v1861_v57 = vsub.f32 %v1822_v56, %v4963_v63 }
 0x3a5   : > { %v4438_v59 = vpop.eup %4437  ;;  %4453 = vrcp.f32 %v1901_v42  ;;  %v1889_v62 = vmul.f32 1.442695, %v1862_v26 }
 0x3a6   : > { %v4440_v33 = vpop.eup %4439  ;;  %v1904_v18 = vadd.f32 1.0, %v4438_v59  ;;  %4455 = vpow2.f32 %v1883_v12  ;;  %v1887_v60 = vmul.f32 1.442695, %v1861_v57  ;;  %v3851_v2 = vpop.f32.mrb[38].mxu1 }
 0x3a7   : > { %v1903_v3 = vadd.f32 1.0, %v4440_v33  ;;  %4457 = vpow2.f32 %v1889_v62  ;;  %v1864_v21 = vsub.f32 %v3851_v2, %v4965_v14  ;;  %v1832_v50 = vpop.f32.mrb[39].mxu1 }
 0x3a8   : > { %4459 = vrcp.f32 %v1904_v18  ;;  %v1863_v9 = vsub.f32 %v1832_v50, %v4967_v10 }
 0x3a9   : > { %v4442_v5 = vpop.eup %4441  ;;  %4461 = vrcp.f32 %v1903_v3  ;;  %v1893_v22 = vmul.f32 1.442695, %v1864_v21 }
 0x3aa   : > { %v4444_v63 = vpop.eup %4443  ;;  %v1906_v16 = vadd.f32 1.0, %v4442_v5  ;;  %4463 = vpow2.f32 %v1887_v60  ;;  %v1891_v6 = vmul.f32 1.442695, %v1863_v9  ;;  %v3854_v11 = vpop.f32.mrb[40].mxu1 }
 0x3ab   : > { %v4446_v49 = vpop.eup %4445  ;;  %4465 = vpow2.f32 %v1893_v22  ;;  %v1866_v20 = vsub.f32 %v3854_v11, %v4969_v15  ;;  %v1842_v34 = vpop.f32.mrb[41].mxu1  ;;  %v1932_v17 = vsub.f32 1.0, %v4444_v63 }
 0x3ac   : > { %v4448_v41 = vpop.eup %4447  ;;  %4467 = vrcp.f32 %v1906_v16  ;;  %v1865_v14 = vsub.f32 %v1842_v34, %v4971_v30  ;;  %v3996_v4 = vpack.c.bf16 %v4444_v63, %v4446_v49  ;;  %v1931_v10 = vsub.f32 1.0, %v4446_v49 }
 0x3ad   : > { %v4450_v53 = vpop.eup %4449  ;;  %v1905_v12 = vadd.f32 1.0, %v4448_v41  ;;  %4469 = vpow2.f32 %v1891_v6  ;;  %v1897_v61 = vmul.f32 1.442695, %v1866_v20 }
 0x3ae   : > { %v4452_v42 = vpop.eup %4451  ;;  %v1908_v26 = vadd.f32 1.0, %v4450_v53  ;;  %v1895_v56 = vmul.f32 1.442695, %v1865_v14  ;;  %3997 = vmatpush3.bf16.xpose.msra.mxu0 %v3996_v4  ;;  %v4044_v57 = vpack.c.bf16 %v1932_v17, %v1931_v10 }
 0x3af   : > { %v4454_v59 = vpop.eup %4453  ;;  %4471 = vrcp.f32 %v1905_v12  ;;  %3998 = vmatprep.subr.bf16.mxu0 %v4504_v58  ;;  %v1934_v15 = vsub.f32 1.0, %v4452_v42 }
 0x3b0   : > { %v4456_v62 = vpop.eup %4455  ;;  %4473 = vrcp.f32 %v1908_v26  ;;  %4045 = vmatpush3.bf16.xpose.msra.mxu1 %v4044_v57  ;;  %v3999_v30 = vpack.c.bf16 %v4452_v42, %v4454_v59  ;;  %v1933_v33 = vsub.f32 1.0, %v4454_v59 }
 0x3b1   : > { %v4458_v18 = vpop.eup %4457  ;;  %v1907_v60 = vadd.f32 1.0, %v4456_v62  ;;  %4475 = vpow2.f32 %v1897_v61  ;;  %4046 = vmatprep.subr.bf16.mxu1 %v4504_v58 }
 0x3b2   : > { %v4460_v2 = vpop.eup %4459  ;;  %v1910_v3 = vadd.f32 1.0, %v4458_v18  ;;  %4477 = vpow2.f32 %v1895_v56  ;;  %v4047_v21 = vpack.c.bf16 %v1934_v15, %v1933_v33 }
 0x3b3   : > { %v4462_v50 = vpop.eup %4461  ;;  %4479 = vrcp.f32 %v1907_v60  ;;  %v1936_v9 = vsub.f32 1.0, %v4460_v2 }
 0x3b4   : > { %v4464_v5 = vpop.eup %4463  ;;  %4481 = vrcp.f32 %v1910_v3  ;;  %v4002_v22 = vpack.c.bf16 %v4460_v2, %v4462_v50  ;;  %v1935_v63 = vsub.f32 1.0, %v4462_v50 }
 0x3b5   : > { %v4466_v16 = vpop.eup %4465  ;;  %v1909_v6 = vadd.f32 1.0, %v4464_v5 }
 0x3b6   : > { %v4468_v11 = vpop.eup %4467  ;;  %v1912_v49 = vadd.f32 1.0, %v4466_v16  ;;  %4000 = vmatpush3.bf16.xpose.msra.mxu0 %v3999_v30  ;;  %v4050_v20 = vpack.c.bf16 %v1936_v9, %v1935_v63 }
 0x3b7   : > { %v4470_v34 = vpop.eup %4469  ;;  %4483 = vrcp.f32 %v1909_v6  ;;  %4001 = vmatprep.subr.bf16.mxu0 %v4504_v58  ;;  %v1938_v41 = vsub.f32 1.0, %v4468_v11 }
 0x3b8   : > { %4485 = vrcp.f32 %v1912_v49  ;;  %v1911_v17 = vadd.f32 1.0, %v4470_v34  ;;  %4048 = vmatpush3.bf16.xpose.msra.mxu1 %v4047_v21 }
 0x3b9   : > { %v4472_v14 = vpop.eup %4471  ;;  %4049 = vmatprep.subr.bf16.mxu1 %v4504_v58 }
 0x3ba   : > { %v4474_v4 = vpop.eup %4473  ;;  %4487 = vrcp.f32 %v1911_v17  ;;  %v4005_v10 = vpack.c.bf16 %v4468_v11, %v4472_v14  ;;  %v1937_v53 = vsub.f32 1.0, %v4472_v14 }
 0x3bb   : > { %v4476_v12 = vpop.eup %4475  ;;  %v1940_v56 = vsub.f32 1.0, %v4474_v4 }
 0x3bc   : > { %v4478_v61 = vpop.eup %4477  ;;  %v1914_v42 = vadd.f32 1.0, %v4476_v12  ;;  %v4053_v26 = vpack.c.bf16 %v1938_v41, %v1937_v53  ;;  %v489_v41 = vpop.permute.xlu0 %488  ;;  %v2243_v12 = vld [vmem:[%s5850_s4 + $0x50] sm:$0xff] }
 0x3bd   : > { %v4480_v57 = vpop.eup %4479  ;;  %v1913_v59 = vadd.f32 1.0, %v4478_v61  ;;  %v1405_v14 = vadd.f32 %v4799_v24, %v489_v41  ;;  %v5852_v24 = vpack.c.bf16 %v4848_v0, %v4850_v35  ;;  %v5857_v0 = vpack.c.bf16 %v4921_v51, %v4923_v52  ;;  %v2234_v35 = vld [vmem:[%s5850_s4 + $0x8] sm:$0xff]  ;;  %v2248_v51 = vld [vmem:[%s5850_s4 + $0x78] sm:$0xff]  ;;  %v2247_v61 = vld [vmem:[%s5850_s4 + $0x70] sm:$0xff] }
 0x3be   : > { %v4482_v15 = vpop.eup %4481  ;;  %4489 = vrcp.f32 %v1914_v42  ;;  %4003 = vmatpush3.bf16.xpose.msra.mxu0 %v4002_v22  ;;  %v4008_v62 = vpack.c.bf16 %v4474_v4, %v4480_v57  ;;  %v1939_v30 = vsub.f32 1.0, %v4480_v57  ;;  %v1700_v4 = vadd.f32 %v4894_v28, %v489_v41  ;;  %v2246_v28 = vld [vmem:[%s5850_s4 + $0x68] sm:$0xff]  ;;  %v2249_v57 = vld [vmem:[%s5850_s4 + $0x80] sm:$0xff] }
 0x3bf   : > { %4491 = vrcp.f32 %v1913_v59  ;;  %4004 = vmatprep.subr.bf16.mxu0 %v4504_v58  ;;  %v1942_v18 = vsub.f32 1.0, %v4482_v15  ;;  %v561_v52 = vadd.f32 %v4611_v13, %v489_v41  ;;  %v936_v13 = vadd.f32 %v4617_v23, %v489_v41  ;;  %v2256_v23 = vld [vmem:[%s5850_s4 + $0xb8] sm:$0xff]  ;;  %v2253_v59 = vld [vmem:[%s5850_s4 + $0xa0] sm:$0xff] }
 0x3c0   : > { %4051 = vmatpush3.bf16.xpose.msra.mxu1 %v4050_v20  ;;  %v4056_v33 = vpack.c.bf16 %v1940_v56, %v1939_v30  ;;  %v4097_v42 = vpack.c.bf16 %v2245_v55, %v2241_v54  ;;  %v2262_v30 = vld [vmem:[%s5850_s4 + $0xe8] sm:$0xff]  ;;  %v2285_v54 = vld [vmem:[%s5850_s4 + $0x1a0] sm:$0xff] }
 0x3c1   : > { %v4484_v60 = vpop.eup %4483  ;;  %4052 = vmatprep.subr.bf16.mxu1 %v4504_v58 }
 0x3c2   : > { %v4486_v2 = vpop.eup %4485  ;;  %v4011_v3 = vpack.c.bf16 %v4482_v15, %v4484_v60  ;;  %v1941_v21 = vsub.f32 1.0, %v4484_v60  ;;  %v4129_v15 = vpack.c.bf16 %v2247_v61, %v2243_v12  ;;  %v2255_v60 = vld [vmem:[%s5850_s4 + $0xb0] sm:$0xff]  ;;  %v2294_v12 = vld [vmem:[%s5850_s4 + $0x1e8] sm:$0xff]  ;;  %v2292_v61 = vld [vmem:[%s5850_s4 + $0x1d8] sm:$0xff] }
 0x3c3   : > { %v1944_v50 = vsub.f32 1.0, %v4486_v2 }
 0x3c4   : > { %v4488_v9 = vpop.eup %4487  ;;  %v4059_v5 = vpack.c.bf16 %v1942_v18, %v1941_v21  ;;  %v2251_v18 = vld [vmem:[%s5850_s4 + $0x90] sm:$0xff]  ;;  %v2264_v21 = vld [vmem:[%s5850_s4 + $0xf8] sm:$0xff] }
 0x3c5   : > { %v4014_v63 = vpack.c.bf16 %v4486_v2, %v4488_v9  ;;  %v1943_v16 = vsub.f32 1.0, %v4488_v9  ;;  %v4101_v2 = vpack.c.bf16 %v2253_v59, %v2249_v57  ;;  %v2257_v9 = vld [vmem:[%s5850_s4 + $0xc0] sm:$0xff]  ;;  %v2291_v59 = vld [vmem:[%s5850_s4 + $0x1d0] sm:$0xff] }
 0x3c6   : > { %4006 = vmatpush3.bf16.xpose.msra.mxu0 %v4005_v10  ;;  %v2254_v10 = vld [vmem:[%s5850_s4 + $0xa8] sm:$0xff]  ;;  %v2293_v57 = vld [vmem:[%s5850_s4 + $0x1e0] sm:$0xff] }
 0x3c7   : > { %4007 = vmatprep.subr.bf16.mxu0 %v4504_v58  ;;  %v4062_v22 = vpack.c.bf16 %v1944_v50, %v1943_v16  ;;  %v2266_v16 = vld [vmem:[%s5850_s4 + $0x108] sm:$0xff] }
 0x3c8   : > { %v4490_v6 = vpop.eup %4489  ;;  %4054 = vmatpush3.bf16.xpose.msra.mxu1 %v4053_v26  ;;  %v2252_v26 = vld [vmem:[%s5850_s4 + $0x98] sm:$0xff] }
 0x3c9   : > { %v4492_v11 = vpop.eup %4491  ;;  %4055 = vmatprep.subr.bf16.mxu1 %v4504_v58  ;;  %v1946_v49 = vsub.f32 1.0, %v4490_v6 }
 0x3ca   : > { %v4017_v20 = vpack.c.bf16 %v4490_v6, %v4492_v11  ;;  %v1945_v34 = vsub.f32 1.0, %v4492_v11  ;;  %v2259_v11 = vld [vmem:[%s5850_s4 + $0xd0] sm:$0xff] }
 0x3cc   : > { %v4065_v17 = vpack.c.bf16 %v1946_v49, %v1945_v34  ;;  %v2263_v49 = vld [vmem:[%s5850_s4 + $0xf0] sm:$0xff]  ;;  %v2268_v34 = vld [vmem:[%s5850_s4 + $0x118] sm:$0xff] }
 0x3ce   : > { %4009 = vmatpush3.bf16.xpose.msra.mxu0 %v4008_v62  ;;  %v2258_v62 = vld [vmem:[%s5850_s4 + $0xc8] sm:$0xff] }
 0x3cf   : > { %4010 = vmatprep.subr.bf16.mxu0 %v4504_v58  ;;  %v4103_v50 = vpack.c.bf16 %v2262_v30, %v2258_v62  ;;  %v2295_v62 = vld [vmem:[%s5850_s4 + $0x1f0] sm:$0xff]  ;;  %v3352_v30 = vld [vmem:[%s5850_s4 + $0x208] sm:$0xff] }
 0x3d0   : > { %4057 = vmatpush3.bf16.xpose.msra.mxu1 %v4056_v33  ;;  %v4131_v33 = vpack.c.bf16 %v2256_v23, %v2252_v26 }
 0x3d1   : > { %4058 = vmatprep.subr.bf16.mxu1 %v4504_v58 }
 0x3d6   : > { %4012 = vmatpush3.bf16.xpose.msra.mxu0 %v4011_v3  ;;  %v2260_v3 = vld [vmem:[%s5850_s4 + $0xd8] sm:$0xff] }
 0x3d7   : > { %4013 = vmatprep.subr.bf16.mxu0 %v4504_v58  ;;  %v4135_v6 = vpack.c.bf16 %v2264_v21, %v2260_v3  ;;  %v3358_v3 = vld [vmem:[%s5850_s4 + $0x238] sm:$0xff] }
 0x3d8   : > { %4060 = vmatpush3.bf16.xpose.msra.mxu1 %v4059_v5  ;;  %v2261_v5 = vld [vmem:[%s5850_s4 + $0xe0] sm:$0xff] }
 0x3d9   : > { %4061 = vmatprep.subr.bf16.mxu1 %v4504_v58 }
 0x3de   : > { %4015 = vmatpush3.bf16.xpose.msra.mxu0 %v4014_v63  ;;  %v4133_v63 = vpack.c.bf16 %v2255_v60, %v2251_v18  ;;  %v4153_v18 = vpack.c.bf16 %v2295_v62, %v2291_v59  ;;  %v3387_v62 = vld [vmem:[%s5850_s4 + $0x320] sm:$0xff] }
 0x3df   : > { %4016 = vmatprep.subr.bf16.mxu0 %v4504_v58 }
 0x3e0   : > { %4063 = vmatpush3.bf16.xpose.msra.mxu1 %v4062_v22  ;;  %v2270_v22 = vld [vmem:[%s5850_s4 + $0x128] sm:$0xff] }
 0x3e1   : > { %4064 = vmatprep.subr.bf16.mxu1 %v4504_v58  ;;  %v4107_v41 = vpack.c.bf16 %v2270_v22, %v2266_v16  ;;  %v3351_v16 = vld [vmem:[%s5850_s4 + $0x200] sm:$0xff] }
 0x3e2   : > { %v3355_v22 = vld [vmem:[%s5850_s4 + $0x220] sm:$0xff] }
 0x3e6   : > { %4018 = vmatpush3.bf16.xpose.msra.mxu0 %v4017_v20  ;;  %v4105_v20 = vpack.c.bf16 %v2261_v5, %v2257_v9 }
 0x3e7   : > { %4019 = vmatprep.subr.bf16.mxu0 %v4504_v58 }
 0x3e8   : > { %4066 = vmatpush3.bf16.xpose.msra.mxu1 %v4065_v17  ;;  %v2272_v17 = vld [vmem:[%s5850_s4 + $0x138] sm:$0xff] }
 0x3e9   : > { %4067 = vmatprep.subr.bf16.mxu1 %v4504_v58 }
 0x3ed   : > { %3888 = vmatmul.mubr.f32.vlgmr.msra.gmra.mrb[42].mxu0 %v1405_v14  ;;  %v2265_v14 = vld [vmem:[%s5850_s4 + $0x100] sm:$0xff] }
 0x3ee   : > { %4021 = vmatpush3.bf16.xpose.msra.mxu0 %v4020_v44  ;;  %3922 = vmatprep.mubr.msk.f32.mxu0 %vm4502_vm2, %v4501_v1  ;;  %v5855_v44 = vpack.c.bf16 %v4884_v7, %v4886_v25  ;;  %v2237_v7 = vld [vmem:[%s5850_s4 + $0x20] sm:$0xff]  ;;  %v2242_v25 = vld [vmem:[%s5850_s4 + $0x48] sm:$0xff] }
 0x3ef   : > { %3958 = vmatmul.mubr.f32.vlgmr.msra.gmra.mrb[42].mxu1 %v1700_v4  ;;  %4022 = vmatprep.subr.bf16.mxu0 %v4504_v58  ;;  %v2269_v4 = vld [vmem:[%s5850_s4 + $0x120] sm:$0xff] }
 0x3f0   : > { %4069 = vmatpush3.bf16.xpose.msra.mxu1 %v4844_v31  ;;  %3992 = vmatprep.mubr.msk.f32.mxu1 %vm4502_vm2, %v4501_v1  ;;  %v5856_v31 = vpack.c.bf16 %v4903_v47, %v4905_v48  ;;  %v2239_v47 = vld [vmem:[%s5850_s4 + $0x30] sm:$0xff] }
 0x3f1   : > { %4070 = vmatprep.subr.bf16.mxu1 %v4504_v58 }
 0x3f6   : > { %4024 = vmatpush3.bf16.xpose.msra.mxu0 %v5852_v24  ;;  %v4137_v24 = vpack.c.bf16 %v2263_v49, %v2259_v11  ;;  %v3357_v11 = vld [vmem:[%s5850_s4 + $0x230] sm:$0xff]  ;;  %v3360_v49 = vld [vmem:[%s5850_s4 + $0x248] sm:$0xff] }
 0x3f7   : > { %4025 = vmatprep.subr.bf16.mxu0 %v4504_v58 }
 0x3f8   : > { %4072 = vmatpush3.bf16.xpose.msra.mxu1 %v4856_v37  ;;  %v2238_v37 = vld [vmem:[%s5850_s4 + $0x28] sm:$0xff] }
 0x3f9   : > { %4073 = vmatprep.subr.bf16.mxu1 %v4504_v58 }
 0x3fe   : > { %4027 = vmatpush3.bf16.xpose.msra.mxu0 %v5853_v43  ;;  %v4139_v43 = vpack.c.bf16 %v2272_v17, %v2268_v34  ;;  %v3362_v34 = vld [vmem:[%s5850_s4 + $0x258] sm:$0xff] }
 0x3ff   : > { %4028 = vmatprep.subr.bf16.mxu0 %v4504_v58  ;;  %v3366_v17 = vld [vmem:[%s5850_s4 + $0x278] sm:$0xff] }
 0x400   : > { %4075 = vmatpush3.bf16.xpose.msra.mxu1 %v4868_v45  ;;  %v4091_v45 = vpack.c.bf16 %v2238_v37, %v2234_v35  ;;  %v2274_v35 = vld [vmem:[%s5850_s4 + $0x148] sm:$0xff] }
 0x401   : > { %4076 = vmatprep.subr.bf16.mxu1 %v4504_v58  ;;  %v2278_v37 = vld [vmem:[%s5850_s4 + $0x168] sm:$0xff] }
 0x402   : > { %v4111_v8 = vpack.c.bf16 %v2278_v37, %v2274_v35  ;;  %v4191_v35 = vpack.c.bf16 %v3366_v17, %v3362_v34  ;;  %v3365_v37 = vld [vmem:[%s5850_s4 + $0x270] sm:$0xff]  ;;  %v3404_v34 = vld [vmem:[%s5850_s4 + $0x3a8] sm:$0xff]  ;;  %v3402_v17 = vld [vmem:[%s5850_s4 + $0x398] sm:$0xff] }
 0x406   : > { %4030 = vmatpush3.bf16.xpose.msra.mxu0 %v5854_v27  ;;  %v2267_v27 = vld [vmem:[%s5850_s4 + $0x110] sm:$0xff] }
 0x407   : > { %4031 = vmatprep.subr.bf16.mxu0 %v4504_v58 }
 0x408   : > { %4078 = vmatpush3.bf16.xpose.msra.mxu1 %v4880_v36  ;;  %v2233_v36 = vld [vmem:[%s5850_s4] sm:$0xff] }
 0x409   : > { %4079 = vmatprep.subr.bf16.mxu1 %v4504_v58  ;;  %v4093_v48 = vpack.c.bf16 %v2237_v7, %v2233_v36 }
 0x40e   : > { %4033 = vmatpush3.bf16.xpose.msra.mxu0 %v5855_v44  ;;  %v2271_v44 = vld [vmem:[%s5850_s4 + $0x130] sm:$0xff] }
 0x40f   : > { %4034 = vmatprep.subr.bf16.mxu0 %v4504_v58 }
 0x410   : > { %4081 = vmatpush3.bf16.xpose.msra.mxu1 %v4897_v29  ;;  %v2235_v29 = vld [vmem:[%s5850_s4 + $0x10] sm:$0xff] }
 0x411   : > { %4082 = vmatprep.subr.bf16.mxu1 %v4504_v58 }
 0x416   : > { %4036 = vmatpush3.bf16.xpose.msra.mxu0 %v5856_v31  ;;  %v4109_v31 = vpack.c.bf16 %v2269_v4, %v2265_v14  ;;  %v4157_v4 = vpack.c.bf16 %v3355_v22, %v3351_v16  ;;  %v3395_v16 = vld [vmem:[%s5850_s4 + $0x360] sm:$0xff] }
 0x417   : > { %4037 = vmatprep.subr.bf16.mxu0 %v4504_v58 }
 0x418   : > { %4084 = vmatpush3.bf16.xpose.msra.mxu1 %v4915_v19  ;;  %v2244_v19 = vld [vmem:[%s5850_s4 + $0x58] sm:$0xff] }
 0x419   : > { %4085 = vmatprep.subr.bf16.mxu1 %v4504_v58  ;;  %v4127_v53 = vpack.c.bf16 %v2248_v51, %v2244_v19  ;;  %v2284_v19 = vld [vmem:[%s5850_s4 + $0x198] sm:$0xff] }
 0x41e   : > { %4039 = vmatpush3.bf16.xpose.msra.mxu0 %v5857_v0  ;;  %v4141_v0 = vpack.c.bf16 %v2271_v44, %v2267_v27  ;;  %v3363_v27 = vld [vmem:[%s5850_s4 + $0x260] sm:$0xff]  ;;  %v3361_v44 = vld [vmem:[%s5850_s4 + $0x250] sm:$0xff] }
 0x41f   : > { %4040 = vmatprep.subr.bf16.mxu0 %v4504_v58 }
 0x420   : > { %4087 = vmatpush3.bf16.xpose.msra.mxu1 %v4933_v38  ;;  %v4095_v38 = vpack.c.bf16 %v2246_v28, %v2242_v25  ;;  %v2275_v25 = vld [vmem:[%s5850_s4 + $0x150] sm:$0xff] }
 0x421   : > { %4088 = vmatprep.subr.bf16.mxu1 %v4504_v58  ;;  %v2250_v58 = vld [vmem:[%s5850_s4 + $0x88] sm:$0xff]  ;;  %v2279_v28 = vld [vmem:[%s5850_s4 + $0x170] sm:$0xff] }
 0x422   : > { %v4099_v56 = vpack.c.bf16 %v2254_v10, %v2250_v58  ;;  %v2283_v58 = vld [vmem:[%s5850_s4 + $0x190] sm:$0xff] }
 0x423   : > { %v2287_v10 = vld [vmem:[%s5850_s4 + $0x1b0] sm:$0xff] }
 0x426   : > { %4042 = vmatpush3.bf16.xpose.msra.mxu0 %v5858_v32  ;;  %v2277_v32 = vld [vmem:[%s5850_s4 + $0x160] sm:$0xff] }
 0x427   : > { %4092 = vmatprep.subr.bf16.mxu0 %v4091_v45  ;;  %v2280_v45 = vld [vmem:[%s5850_s4 + $0x178] sm:$0xff] }
 0x428   : > { %4090 = vmatpush3.bf16.xpose.msra.mxu1 %v4951_v39  ;;  %v4125_v39 = vpack.c.bf16 %v2239_v47, %v2235_v29  ;;  %v4143_v36 = vpack.c.bf16 %v2280_v45, %v2276_v40  ;;  %v4145_v29 = vpack.c.bf16 %v2279_v28, %v2275_v25  ;;  %v2282_v47 = vld [vmem:[%s5850_s4 + $0x188] sm:$0xff]  ;;  %v3367_v25 = vld [vmem:[%s5850_s4 + $0x280] sm:$0xff] }
 0x429   : > { %4124 = vmatprep.subr.bf16.mxu1 %v4123_v46  ;;  %v2273_v46 = vld [vmem:[%s5850_s4 + $0x140] sm:$0xff]  ;;  %v3368_v40 = vld [vmem:[%s5850_s4 + $0x288] sm:$0xff] }
 0x42a   : > { %v4113_v7 = vpack.c.bf16 %v2277_v32, %v2273_v46  ;;  %v3372_v45 = vld [vmem:[%s5850_s4 + $0x2a8] sm:$0xff]  ;;  %v3370_v46 = vld [vmem:[%s5850_s4 + $0x298] sm:$0xff]  ;;  %v3371_v28 = vld [vmem:[%s5850_s4 + $0x2a0] sm:$0xff] }
 0x42b   : > { %v3374_v32 = vld [vmem:[%s5850_s4 + $0x2b8] sm:$0xff] }
 0x42d   : > { %3923 = vmatmul.mubr.f32.vlgmr.msra.gmra.mrb[42].mxu0 %v561_v52  ;;  %v2288_v52 = vld [vmem:[%s5850_s4 + $0x1b8] sm:$0xff] }
 0x42e   : > { %4094 = vmatpush1.bf16.msra.mxu0 %v4093_v48  ;;  %2367 = vmatprep.mubr.f32.mxu0 %v4501_v1  ;;  %v2286_v48 = vld [vmem:[%s5850_s4 + $0x1a8] sm:$0xff]  ;;  %v4147_v55 = vpack.c.bf16 %v2288_v52, %v2284_v19  ;;  %v3373_v19 = vld [vmem:[%s5850_s4 + $0x2b0] sm:$0xff] }
 0x42f   : > { %3993 = vmatmul.mubr.f32.vlgmr.msra.gmra.mrb[42].mxu1 %v936_v13  ;;  %4096 = vmatprep.subr.bf16.mxu0 %v4095_v38  ;;  %v4115_v51 = vpack.c.bf16 %v2286_v48, %v2282_v47  ;;  %v2281_v38 = vld [vmem:[%s5850_s4 + $0x180] sm:$0xff]  ;;  %v2290_v13 = vld [vmem:[%s5850_s4 + $0x1c8] sm:$0xff]  ;;  %v4195_v47 = vpack.c.bf16 %v3374_v32, %v3370_v46  ;;  %v3369_v48 = vld [vmem:[%s5850_s4 + $0x290] sm:$0xff] }
 0x430   : > { %4126 = vmatpush1.bf16.msra.mxu1 %v4125_v39  ;;  %2438 = vmatprep.mubr.f32.mxu1 %v4501_v1  ;;  %v4117_v39 = vpack.c.bf16 %v2285_v54, %v2281_v38  ;;  %v4119_v26 = vpack.c.bf16 %v2294_v12, %v2290_v13  ;;  %v3380_v52 = vld [vmem:[%s5850_s4 + $0x2e8] sm:$0xff]  ;;  %v3378_v38 = vld [vmem:[%s5850_s4 + $0x2d8] sm:$0xff]  ;;  %v3377_v12 = vld [vmem:[%s5850_s4 + $0x2d0] sm:$0xff] }
 0x431   : > { %4128 = vmatprep.subr.bf16.mxu1 %v4127_v53  ;;  %v4149_v53 = vpack.c.bf16 %v2287_v10, %v2283_v58  ;;  %v3382_v54 = vld [vmem:[%s5850_s4 + $0x2f8] sm:$0xff]  ;;  %v3375_v58 = vld [vmem:[%s5850_s4 + $0x2c0] sm:$0xff] }
 0x432   : > { %4098 = vmatpush1.bf16.msra.mxu0 %v4097_v42  ;;  %v2296_v42 = vld [vmem:[%s5850_s4 + $0x1f8] sm:$0xff]  ;;  %v3379_v10 = vld [vmem:[%s5850_s4 + $0x2e0] sm:$0xff] }
 0x433   : > { %4100 = vmatprep.subr.bf16.mxu0 %v4099_v56  ;;  %v4151_v23 = vpack.c.bf16 %v2296_v42, %v2292_v61  ;;  %v2289_v56 = vld [vmem:[%s5850_s4 + $0x1c0] sm:$0xff]  ;;  %v3381_v61 = vld [vmem:[%s5850_s4 + $0x2f0] sm:$0xff]  ;;  %v3384_v42 = vld [vmem:[%s5850_s4 + $0x308] sm:$0xff] }
 0x434   : > { %4130 = vmatpush1.bf16.msra.mxu1 %v4129_v15  ;;  %v4121_v15 = vpack.c.bf16 %v2293_v57, %v2289_v56  ;;  %v3390_v56 = vld [vmem:[%s5850_s4 + $0x338] sm:$0xff]  ;;  %v4169_v57 = vpack.c.bf16 %v3379_v10, %v3375_v58  ;;  %v4201_v59 = vpack.c.bf16 %v3381_v61, %v3377_v12  ;;  %v3407_v32 = vld [vmem:[%s5850_s4 + $0x3c0] sm:$0xff]  ;;  %v3424_v12 = vld [vmem:[%s5850_s4 + $0x448] sm:$0xff] }
 0x435   : > { %4132 = vmatprep.subr.bf16.mxu1 %v4131_v33  ;;  %v3356_v33 = vld [vmem:[%s5850_s4 + $0x228] sm:$0xff] }
 0x436   : > { %4102 = vmatpush1.bf16.msra.mxu0 %v4101_v2  ;;  %v4155_v60 = vpack.c.bf16 %v3356_v33, %v3352_v30  ;;  %v3354_v2 = vld [vmem:[%s5850_s4 + $0x218] sm:$0xff] }
 0x437   : > { %4104 = vmatprep.subr.bf16.mxu0 %v4103_v50  ;;  %v4187_v21 = vpack.c.bf16 %v3358_v3, %v3354_v2  ;;  %v3392_v2 = vld [vmem:[%s5850_s4 + $0x348] sm:$0xff] }
 0x438   : > { %4134 = vmatpush1.bf16.msra.mxu1 %v4133_v63  ;;  %v3396_v3 = vld [vmem:[%s5850_s4 + $0x368] sm:$0xff] }
 0x439   : > { %4136 = vmatprep.subr.bf16.mxu1 %v4135_v6  ;;  %v3353_v6 = vld [vmem:[%s5850_s4 + $0x210] sm:$0xff]  ;;  %v4175_v22 = vpack.c.bf16 %v3396_v3, %v3392_v2  ;;  %v3432_v2 = vld [vmem:[%s5850_s4 + $0x488] sm:$0xff] }
 0x43a   : > { %4106 = vmatpush1.bf16.msra.mxu0 %v4105_v20  ;;  %v3364_v20 = vld [vmem:[%s5850_s4 + $0x268] sm:$0xff] }
 0x43b   : > { %4108 = vmatprep.subr.bf16.mxu0 %v4107_v41 }
 0x43c   : > { %4138 = vmatpush1.bf16.msra.mxu1 %v4137_v24  ;;  %v4189_v24 = vpack.c.bf16 %v3357_v11, %v3353_v6  ;;  %v3393_v11 = vld [vmem:[%s5850_s4 + $0x350] sm:$0xff] }
 0x43d   : > { %4140 = vmatprep.subr.bf16.mxu1 %v4139_v43  ;;  %v3359_v43 = vld [vmem:[%s5850_s4 + $0x240] sm:$0xff] }
 0x43e   : > { %4110 = vmatpush1.bf16.msra.mxu0 %v4109_v31 }
 0x43f   : > { %4112 = vmatprep.subr.bf16.mxu0 %v4111_v8 }
 0x440   : > { %4142 = vmatpush1.bf16.msra.mxu1 %v4141_v0  ;;  %v4159_v0 = vpack.c.bf16 %v3364_v20, %v3360_v49  ;;  %v3397_v49 = vld [vmem:[%s5850_s4 + $0x370] sm:$0xff]  ;;  %v3400_v20 = vld [vmem:[%s5850_s4 + $0x388] sm:$0xff] }
 0x441   : > { %4144 = vmatprep.subr.bf16.mxu1 %v4143_v36  ;;  %v4161_v36 = vpack.c.bf16 %v3363_v27, %v3359_v43  ;;  %v3403_v43 = vld [vmem:[%s5850_s4 + $0x3a0] sm:$0xff]  ;;  %v4179_v27 = vpack.c.bf16 %v3404_v34, %v3400_v20  ;;  %v3437_v20 = vld [vmem:[%s5850_s4 + $0x4b0] sm:$0xff]  ;;  %v3440_v34 = vld [vmem:[%s5850_s4 + $0x4c8] sm:$0xff] }
 0x442   : > { %4114 = vmatpush1.bf16.msra.mxu0 %v4113_v7  ;;  %v4193_v7 = vpack.c.bf16 %v3365_v37, %v3361_v44  ;;  %v3412_v37 = vld [vmem:[%s5850_s4 + $0x3e8] sm:$0xff] }
 0x443   : > { %4116 = vmatprep.subr.bf16.mxu0 %v4115_v51  ;;  %v3376_v51 = vld [vmem:[%s5850_s4 + $0x2c8] sm:$0xff] }
 0x444   : > { %4146 = vmatpush1.bf16.msra.mxu1 %v4145_v29  ;;  %v4163_v29 = vpack.c.bf16 %v3372_v45, %v3368_v40  ;;  %v4167_v13 = vpack.c.bf16 %v3380_v52, %v3376_v51  ;;  %v3410_v40 = vld [vmem:[%s5850_s4 + $0x3d8] sm:$0xff] }
 0x445   : > { %4148 = vmatprep.subr.bf16.mxu1 %v4147_v55  ;;  %v4165_v55 = vpack.c.bf16 %v3371_v28, %v3367_v25  ;;  %v3409_v28 = vld [vmem:[%s5850_s4 + $0x3d0] sm:$0xff]  ;;  %v3422_v51 = vld [vmem:[%s5850_s4 + $0x438] sm:$0xff] }
 0x446   : > { %4118 = vmatpush1.bf16.msra.mxu0 %v4117_v39  ;;  %v4197_v39 = vpack.c.bf16 %v3373_v19, %v3369_v48  ;;  %v3420_v48 = vld [vmem:[%s5850_s4 + $0x428] sm:$0xff]  ;;  %v3418_v19 = vld [vmem:[%s5850_s4 + $0x418] sm:$0xff] }
 0x447   : > { %4120 = vmatprep.subr.bf16.mxu0 %v4119_v26  ;;  %v3388_v26 = vld [vmem:[%s5850_s4 + $0x328] sm:$0xff]  ;;  %v4251_v10 = vpack.c.bf16 %v3422_v51, %v3418_v19  ;;  %v3458_v51 = vld [vmem:[%s5850_s4 + $0x558] sm:$0xff] }
 0x448   : > { %4150 = vmatpush1.bf16.msra.mxu1 %v4149_v53  ;;  %v4199_v53 = vpack.c.bf16 %v3382_v54, %v3378_v38  ;;  %v4171_v30 = vpack.c.bf16 %v3388_v26, %v3384_v42  ;;  %v3428_v42 = vld [vmem:[%s5850_s4 + $0x468] sm:$0xff]  ;;  %v3426_v26 = vld [vmem:[%s5850_s4 + $0x458] sm:$0xff] }
 0x449   : > { %4152 = vmatprep.subr.bf16.mxu1 %v4151_v23  ;;  %v3386_v23 = vld [vmem:[%s5850_s4 + $0x318] sm:$0xff]  ;;  %v3460_v19 = vld [vmem:[%s5850_s4 + $0x568] sm:$0xff] }
 0x44a   : > { %4122 = vmatpush1.bf16.msra.mxu0 %v4121_v15  ;;  %v3383_v15 = vld [vmem:[%s5850_s4 + $0x300] sm:$0xff]  ;;  %v4203_v33 = vpack.c.bf16 %v3390_v56, %v3386_v23  ;;  %v3430_v23 = vld [vmem:[%s5850_s4 + $0x478] sm:$0xff] }
 0x44b   : > { %4156 = vmatprep.subr.bf16.mxu0 %v4155_v60  ;;  %v3389_v60 = vld [vmem:[%s5850_s4 + $0x330] sm:$0xff] }
 0x44c   : > { %4154 = vmatpush1.bf16.msra.mxu1 %v4153_v18  ;;  %v3385_v18 = vld [vmem:[%s5850_s4 + $0x310] sm:$0xff] }
 0x44d   : > { %4188 = vmatprep.subr.bf16.mxu1 %v4187_v21  ;;  %v3394_v21 = vld [vmem:[%s5850_s4 + $0x358] sm:$0xff] }
 0x500   : > { %v2083_v50 = vpop.f32.mrb[42].mxu0 }
 0x501   : > { %2227 = vst [vmem:[#allocation2] sm:$0xf] %v2083_v50  ;;  %v3924_v9 = vpop.f32.mrb[43].mxu0  ;;  %v3398_v50 = vld [vmem:[%s5850_s4 + $0x378] sm:$0xff] }
 0x502   : > { %v2223_v5 = vpop.f32.mrb[42].mxu1  ;;  %v4173_v9 = vpack.c.bf16 %v3387_v62, %v3383_v15  ;;  %v4207_v6 = vpack.c.bf16 %v3398_v50, %v3394_v21  ;;  %v3427_v15 = vld [vmem:[%s5850_s4 + $0x460] sm:$0xff]  ;;  %v3425_v62 = vld [vmem:[%s5850_s4 + $0x450] sm:$0xff]  ;;  %v3436_v21 = vld [vmem:[%s5850_s4 + $0x4a8] sm:$0xff] }
 0x503   : > { %2229 = vst [vmem:[#allocation2 + $0x4] sm:$0xf] %v2223_v5  ;;  %v3994_v63 = vpop.f32.mrb[43].mxu1  ;;  %v4205_v5 = vpack.c.bf16 %v3389_v60, %v3385_v18  ;;  %v4255_v18 = vpack.c.bf16 %v3430_v23, %v3426_v26  ;;  %v3429_v60 = vld [vmem:[%s5850_s4 + $0x470] sm:$0xff]  ;;  %v3434_v50 = vld [vmem:[%s5850_s4 + $0x498] sm:$0xff] }
 0x504   : > { %v3391_v63 = vld [vmem:[%s5850_s4 + $0x340] sm:$0xff]  ;;  %v3470_v26 = vld [vmem:[%s5850_s4 + $0x5b8] sm:$0xff] }
 0x508   : > { %v2231_v31 = vld [vmem:[#allocation2] sm:$0x1] }
 0x50a   : > { %v2232_v41 = vld [vmem:[#allocation2 + $0x4] sm:$0x1]  ;;  %v2469_v52 = vld [vmem:[#allocation2 + $0x5] sm:$0x1] }
 0x50b   : > { %v2299_v14 = vrot.slane %v2232_v41, 7  ;;  %v3406_v41 = vld [vmem:[%s5850_s4 + $0x3b8] sm:$0xff]  ;;  %v2537_v61 = vrot.slane %v2469_v52, 7 }
 0x50c   : > { %v4211_v44 = vpack.c.bf16 %v3406_v41, %v3402_v17  ;;  %v3444_v17 = vld [vmem:[%s5850_s4 + $0x4e8] sm:$0xff]  ;;  %v3442_v41 = vld [vmem:[%s5850_s4 + $0x4d8] sm:$0xff] }
 0x50d   : > { %v2301_v8 = vsel %vm2300_vm3, %v2299_v14, %v2231_v31  ;;  %v4177_v14 = vpack.c.bf16 %v3395_v16, %v3391_v63  ;;  %v3401_v31 = vld [vmem:[%s5850_s4 + $0x390] sm:$0xff]  ;;  %v4257_v63 = vpack.c.bf16 %v3429_v60, %v3425_v62  ;;  %v3431_v16 = vld [vmem:[%s5850_s4 + $0x480] sm:$0xff]  ;;  %v3462_v52 = vld [vmem:[%s5850_s4 + $0x578] sm:$0xff] }
 0x50e   : > { %2368 = vmatmul.mubr.f32.vlgmr.msra.gmra.mrb[44].mxu0 %v2301_v8  ;;  %2439 = vmatmul.mubr.f32.vlgmr.msra.gmra.mrb[44].mxu1 %v2301_v8  ;;  %v3414_v8 = vld [vmem:[%s5850_s4 + $0x3f8] sm:$0xff]  ;;  %v3476_v60 = vld [vmem:[%s5850_s4 + $0x5e8] sm:$0xff] }
 0x50f   : > { %4158 = vmatpush1.bf16.msra.mxu0 %v4157_v4  ;;  %4190 = vmatpush1.bf16.msra.mxu1 %v4189_v24  ;;  %v4209_v4 = vpack.c.bf16 %v3397_v49, %v3393_v11  ;;  %v3399_v24 = vld [vmem:[%s5850_s4 + $0x380] sm:$0xff]  ;;  %v4215_v25 = vpack.c.bf16 %v3414_v8, %v3410_v40  ;;  %v3433_v49 = vld [vmem:[%s5850_s4 + $0x490] sm:$0xff]  ;;  %v3452_v40 = vld [vmem:[%s5850_s4 + $0x528] sm:$0xff] }
 0x510   : > { %4160 = vmatprep.subr.bf16.mxu0 %v4159_v0  ;;  %4192 = vmatprep.subr.bf16.mxu1 %v4191_v35  ;;  %v3405_v0 = vld [vmem:[%s5850_s4 + $0x3b0] sm:$0xff]  ;;  %v3408_v35 = vld [vmem:[%s5850_s4 + $0x3c8] sm:$0xff]  ;;  %v4181_v45 = vpack.c.bf16 %v3403_v43, %v3399_v24  ;;  %v4261_v24 = vpack.c.bf16 %v3437_v20, %v3433_v49  ;;  %v3439_v43 = vld [vmem:[%s5850_s4 + $0x4c0] sm:$0xff] }
 0x511   : > { %2604 = vmatprep.mubr.f32.mxu0 %v4501_v1  ;;  %2675 = vmatprep.mubr.f32.mxu1 %v4501_v1  ;;  %v4213_v46 = vpack.c.bf16 %v3405_v0, %v3401_v31  ;;  %v3441_v0 = vld [vmem:[%s5850_s4 + $0x4d0] sm:$0xff]  ;;  %v3450_v8 = vld [vmem:[%s5850_s4 + $0x518] sm:$0xff]  ;;  %v3484_v49 = vld [vmem:[%s5850_s4 + $0x628] sm:$0xff] }
 0x512   : > { %v3482_v20 = vld [vmem:[%s5850_s4 + $0x618] sm:$0xff] }
 0x513   : > { %4162 = vmatpush1.bf16.msra.mxu0 %v4161_v36  ;;  %4194 = vmatpush1.bf16.msra.mxu1 %v4193_v7  ;;  %v3411_v36 = vld [vmem:[%s5850_s4 + $0x3e0] sm:$0xff]  ;;  %v4183_v7 = vpack.c.bf16 %v3412_v37, %v3408_v35  ;;  %v3445_v35 = vld [vmem:[%s5850_s4 + $0x4f0] sm:$0xff]  ;;  %v3448_v37 = vld [vmem:[%s5850_s4 + $0x508] sm:$0xff] }
 0x514   : > { %4164 = vmatprep.subr.bf16.mxu0 %v4163_v29  ;;  %4196 = vmatprep.subr.bf16.mxu1 %v4195_v47  ;;  %v3413_v29 = vld [vmem:[%s5850_s4 + $0x3f0] sm:$0xff]  ;;  %v3416_v47 = vld [vmem:[%s5850_s4 + $0x408] sm:$0xff]  ;;  %v4185_v38 = vpack.c.bf16 %v3411_v36, %v3407_v32  ;;  %v4265_v32 = vpack.c.bf16 %v3445_v35, %v3441_v0  ;;  %v3447_v36 = vld [vmem:[%s5850_s4 + $0x500] sm:$0xff] }
 0x515   : > { %v4217_v54 = vpack.c.bf16 %v3413_v29, %v3409_v28  ;;  %v4219_v58 = vpack.c.bf16 %v3420_v48, %v3416_v47  ;;  %v3449_v29 = vld [vmem:[%s5850_s4 + $0x510] sm:$0xff]  ;;  %v3456_v48 = vld [vmem:[%s5850_s4 + $0x548] sm:$0xff] }
 0x516   : > { %v3453_v47 = vld [vmem:[%s5850_s4 + $0x530] sm:$0xff]  ;;  %v3488_v0 = vld [vmem:[%s5850_s4 + $0x648] sm:$0xff] }
 0x517   : > { %4166 = vmatpush1.bf16.msra.mxu0 %v4165_v55  ;;  %4198 = vmatpush1.bf16.msra.mxu1 %v4197_v39  ;;  %v3415_v55 = vld [vmem:[%s5850_s4 + $0x400] sm:$0xff] }
 0x518   : > { %4168 = vmatprep.subr.bf16.mxu0 %v4167_v13  ;;  %4200 = vmatprep.subr.bf16.mxu1 %v4199_v53  ;;  %v3419_v39 = vld [vmem:[%s5850_s4 + $0x420] sm:$0xff]  ;;  %v3417_v13 = vld [vmem:[%s5850_s4 + $0x410] sm:$0xff] }
 0x519   : > { %v3421_v53 = vld [vmem:[%s5850_s4 + $0x430] sm:$0xff]  ;;  %v4221_v56 = vpack.c.bf16 %v3419_v39, %v3415_v55  ;;  %v3455_v55 = vld [vmem:[%s5850_s4 + $0x540] sm:$0xff] }
 0x51a   : > { %v3459_v39 = vld [vmem:[%s5850_s4 + $0x560] sm:$0xff] }
 0x51b   : > { %4170 = vmatpush1.bf16.msra.mxu0 %v4169_v57  ;;  %4202 = vmatpush1.bf16.msra.mxu1 %v4201_v59  ;;  %v4253_v57 = vpack.c.bf16 %v3421_v53, %v3417_v13  ;;  %v3423_v59 = vld [vmem:[%s5850_s4 + $0x440] sm:$0xff]  ;;  %v3457_v13 = vld [vmem:[%s5850_s4 + $0x550] sm:$0xff]  ;;  %v4241_v23 = vpack.c.bf16 %v3459_v39, %v3455_v55 }
 0x51c   : > { %4172 = vmatprep.subr.bf16.mxu0 %v4171_v30  ;;  %4204 = vmatprep.subr.bf16.mxu1 %v4203_v33  ;;  %v2468_v30 = vld [vmem:[#allocation2 + $0x1] sm:$0x1]  ;;  %v4223_v33 = vpack.c.bf16 %v3428_v42, %v3424_v12  ;;  %v3461_v53 = vld [vmem:[%s5850_s4 + $0x570] sm:$0xff]  ;;  %v3464_v12 = vld [vmem:[%s5850_s4 + $0x588] sm:$0xff] }
 0x51d   : > { %v2538_v3 = vsel %vm2300_vm3, %v2537_v61, %v2468_v30  ;;  %v3468_v61 = vld [vmem:[%s5850_s4 + $0x5a8] sm:$0xff]  ;;  %v3466_v42 = vld [vmem:[%s5850_s4 + $0x598] sm:$0xff]  ;;  %v3465_v30 = vld [vmem:[%s5850_s4 + $0x590] sm:$0xff] }
 0x51e   : > { %v4275_v62 = vpack.c.bf16 %v3470_v26, %v3466_v42  ;;  %v3495_v39 = vld [vmem:[%s5850_s4 + $0x680] sm:$0xff]  ;;  %v3508_v42 = vld [vmem:[%s5850_s4 + $0x6e8] sm:$0xff]  ;;  %v3506_v26 = vld [vmem:[%s5850_s4 + $0x6d8] sm:$0xff] }
 0x51f   : > { %4174 = vmatpush1.bf16.msra.mxu0 %v4173_v9  ;;  %4206 = vmatpush1.bf16.msra.mxu1 %v4205_v5  ;;  %v3438_v9 = vld [vmem:[%s5850_s4 + $0x4b8] sm:$0xff]  ;;  %v4225_v5 = vpack.c.bf16 %v3427_v15, %v3423_v59  ;;  %v3467_v59 = vld [vmem:[%s5850_s4 + $0x5a0] sm:$0xff]  ;;  %v4243_v15 = vpack.c.bf16 %v3468_v61, %v3464_v12  ;;  %v3501_v12 = vld [vmem:[%s5850_s4 + $0x6b0] sm:$0xff] }
 0x520   : > { %4176 = vmatprep.subr.bf16.mxu0 %v4175_v22  ;;  %4208 = vmatprep.subr.bf16.mxu1 %v4207_v6  ;;  %v3435_v22 = vld [vmem:[%s5850_s4 + $0x4a0] sm:$0xff]  ;;  %v4227_v6 = vpack.c.bf16 %v3436_v21, %v3432_v2  ;;  %v4259_v11 = vpack.c.bf16 %v3438_v9, %v3434_v50  ;;  %v3474_v2 = vld [vmem:[%s5850_s4 + $0x5d8] sm:$0xff]  ;;  %v3504_v61 = vld [vmem:[%s5850_s4 + $0x6c8] sm:$0xff] }
 0x521   : > { %v3471_v9 = vld [vmem:[%s5850_s4 + $0x5c0] sm:$0xff] }
 0x523   : > { %4178 = vmatpush1.bf16.msra.mxu0 %v4177_v14  ;;  %4210 = vmatpush1.bf16.msra.mxu1 %v4209_v4  ;;  %v3446_v14 = vld [vmem:[%s5850_s4 + $0x4f8] sm:$0xff]  ;;  %v4229_v4 = vpack.c.bf16 %v3435_v22, %v3431_v16  ;;  %v3473_v22 = vld [vmem:[%s5850_s4 + $0x5d0] sm:$0xff] }
 0x524   : > { %4180 = vmatprep.subr.bf16.mxu0 %v4179_v27  ;;  %4212 = vmatprep.subr.bf16.mxu1 %v4211_v44  ;;  %v3443_v27 = vld [vmem:[%s5850_s4 + $0x4e0] sm:$0xff]  ;;  %v4231_v44 = vpack.c.bf16 %v3444_v17, %v3440_v34  ;;  %v4263_v31 = vpack.c.bf16 %v3446_v14, %v3442_v41  ;;  %v3486_v34 = vld [vmem:[%s5850_s4 + $0x638] sm:$0xff] }
 0x525   : > { %v2706_v17 = vld [vmem:[#allocation2 + $0x6] sm:$0x1] }
 0x526   : > { %v2774_v35 = vrot.slane %v2706_v17, 7 }
 0x527   : > { %4182 = vmatpush1.bf16.msra.mxu0 %v4181_v45  ;;  %4214 = vmatpush1.bf16.msra.mxu1 %v4213_v46  ;;  %v3454_v45 = vld [vmem:[%s5850_s4 + $0x538] sm:$0xff]  ;;  %v4233_v46 = vpack.c.bf16 %v3443_v27, %v3439_v43  ;;  %v4315_v27 = vpack.c.bf16 %v3486_v34, %v3482_v20 }
 0x528   : > { %4184 = vmatprep.subr.bf16.mxu0 %v4183_v7  ;;  %4216 = vmatprep.subr.bf16.mxu1 %v4215_v25  ;;  %v3451_v7 = vld [vmem:[%s5850_s4 + $0x520] sm:$0xff]  ;;  %v4235_v25 = vpack.c.bf16 %v3452_v40, %v3448_v37  ;;  %v4267_v28 = vpack.c.bf16 %v3454_v45, %v3450_v8  ;;  %v3492_v37 = vld [vmem:[%s5850_s4 + $0x668] sm:$0xff]  ;;  %v3490_v40 = vld [vmem:[%s5850_s4 + $0x658] sm:$0xff] }
 0x529   : > { %v3494_v8 = vld [vmem:[%s5850_s4 + $0x678] sm:$0xff] }
 0x52a   : > { %v3522_v20 = vld [vmem:[%s5850_s4 + $0x758] sm:$0xff] }
 0x52b   : > { %4186 = vmatpush1.bf16.msra.mxu0 %v4185_v38  ;;  %4218 = vmatpush1.bf16.msra.mxu1 %v4217_v54  ;;  %v4237_v38 = vpack.c.bf16 %v3451_v7, %v3447_v36  ;;  %v4269_v54 = vpack.c.bf16 %v3453_v47, %v3449_v29  ;;  %v3491_v36 = vld [vmem:[%s5850_s4 + $0x660] sm:$0xff]  ;;  %v3489_v7 = vld [vmem:[%s5850_s4 + $0x650] sm:$0xff]  ;;  %v4319_v29 = vpack.c.bf16 %v3494_v8, %v3490_v40  ;;  %v3526_v34 = vld [vmem:[%s5850_s4 + $0x778] sm:$0xff] }
 0x52c   : > { %4220 = vmatprep.subr.bf16.mxu0 %v4219_v58  ;;  %4252 = vmatprep.subr.bf16.mxu1 %v4251_v10  ;;  %v4239_v58 = vpack.c.bf16 %v3460_v19, %v3456_v48  ;;  %v4271_v10 = vpack.c.bf16 %v3462_v52, %v3458_v51  ;;  %v3493_v47 = vld [vmem:[%s5850_s4 + $0x670] sm:$0xff]  ;;  %v3496_v48 = vld [vmem:[%s5850_s4 + $0x688] sm:$0xff]  ;;  %v3498_v52 = vld [vmem:[%s5850_s4 + $0x698] sm:$0xff] }
 0x52d   : > { %v3500_v51 = vld [vmem:[%s5850_s4 + $0x6a8] sm:$0xff]  ;;  %v4321_v55 = vpack.c.bf16 %v3493_v47, %v3489_v7  ;;  %v3529_v7 = vld [vmem:[%s5850_s4 + $0x790] sm:$0xff]  ;;  %v3538_v47 = vld [vmem:[%s5850_s4 + $0x7d8] sm:$0xff] }
 0x52e   : > { %2605 = vmatmul.mubr.f32.vlgmr.msra.gmra.mrb[46].mxu0 %v2538_v3  ;;  %2676 = vmatmul.mubr.f32.vlgmr.msra.gmra.mrb[46].mxu1 %v2538_v3  ;;  %v3478_v3 = vld [vmem:[%s5850_s4 + $0x5f8] sm:$0xff] }
 0x52f   : > { %4222 = vmatpush1.bf16.msra.mxu0 %v4221_v56  ;;  %4254 = vmatpush1.bf16.msra.mxu1 %v4253_v57  ;;  %v4273_v56 = vpack.c.bf16 %v3461_v53, %v3457_v13  ;;  %v3463_v57 = vld [vmem:[%s5850_s4 + $0x580] sm:$0xff]  ;;  %v4279_v16 = vpack.c.bf16 %v3478_v3, %v3474_v2  ;;  %v3497_v53 = vld [vmem:[%s5850_s4 + $0x690] sm:$0xff]  ;;  %v3514_v2 = vld [vmem:[%s5850_s4 + $0x718] sm:$0xff] }
 0x530   : > { %4224 = vmatprep.subr.bf16.mxu0 %v4223_v33  ;;  %4256 = vmatprep.subr.bf16.mxu1 %v4255_v18  ;;  %v3469_v33 = vld [vmem:[%s5850_s4 + $0x5b0] sm:$0xff]  ;;  %v3472_v18 = vld [vmem:[%s5850_s4 + $0x5c8] sm:$0xff]  ;;  %v4245_v21 = vpack.c.bf16 %v3467_v59, %v3463_v57  ;;  %v4325_v57 = vpack.c.bf16 %v3501_v12, %v3497_v53  ;;  %v3503_v59 = vld [vmem:[%s5850_s4 + $0x6c0] sm:$0xff] }
 0x531   : > { %2841 = vmatprep.mubr.f32.mxu0 %v4501_v1  ;;  %2912 = vmatprep.mubr.f32.mxu1 %v4501_v1  ;;  %v4277_v50 = vpack.c.bf16 %v3469_v33, %v3465_v30  ;;  %v3509_v33 = vld [vmem:[%s5850_s4 + $0x6f0] sm:$0xff]  ;;  %v3518_v3 = vld [vmem:[%s5850_s4 + $0x738] sm:$0xff] }
 0x533   : > { %4226 = vmatpush1.bf16.msra.mxu0 %v4225_v5  ;;  %4258 = vmatpush1.bf16.msra.mxu1 %v4257_v63  ;;  %v3475_v5 = vld [vmem:[%s5850_s4 + $0x5e0] sm:$0xff]  ;;  %v4247_v63 = vpack.c.bf16 %v3476_v60, %v3472_v18  ;;  %v3512_v18 = vld [vmem:[%s5850_s4 + $0x708] sm:$0xff] }
 0x534   : > { %4228 = vmatprep.subr.bf16.mxu0 %v4227_v6  ;;  %4260 = vmatprep.subr.bf16.mxu1 %v4259_v11  ;;  %v3477_v6 = vld [vmem:[%s5850_s4 + $0x5f0] sm:$0xff]  ;;  %v3480_v11 = vld [vmem:[%s5850_s4 + $0x608] sm:$0xff]  ;;  %v4249_v41 = vpack.c.bf16 %v3475_v5, %v3471_v9  ;;  %v3511_v9 = vld [vmem:[%s5850_s4 + $0x700] sm:$0xff] }
 0x535   : > { %v4281_v14 = vpack.c.bf16 %v3477_v6, %v3473_v22  ;;  %v4283_v43 = vpack.c.bf16 %v3484_v49, %v3480_v11  ;;  %v3516_v60 = vld [vmem:[%s5850_s4 + $0x728] sm:$0xff]  ;;  %v3515_v5 = vld [vmem:[%s5850_s4 + $0x720] sm:$0xff]  ;;  %v3513_v22 = vld [vmem:[%s5850_s4 + $0x710] sm:$0xff] }
 0x536   : > { %v3517_v6 = vld [vmem:[%s5850_s4 + $0x730] sm:$0xff]  ;;  %v3520_v11 = vld [vmem:[%s5850_s4 + $0x748] sm:$0xff]  ;;  %v4301_v17 = vpack.c.bf16 %v3515_v5, %v3511_v9 }
 0x537   : > { %4230 = vmatpush1.bf16.msra.mxu0 %v4229_v4  ;;  %4262 = vmatpush1.bf16.msra.mxu1 %v4261_v24  ;;  %v3479_v4 = vld [vmem:[%s5850_s4 + $0x600] sm:$0xff]  ;;  %v3524_v49 = vld [vmem:[%s5850_s4 + $0x768] sm:$0xff] }
 0x538   : > { %4232 = vmatprep.subr.bf16.mxu0 %v4231_v44  ;;  %4264 = vmatprep.subr.bf16.mxu1 %v4263_v31  ;;  %v3483_v24 = vld [vmem:[%s5850_s4 + $0x620] sm:$0xff]  ;;  %v3481_v44 = vld [vmem:[%s5850_s4 + $0x610] sm:$0xff] }
 0x539   : > { %v3485_v31 = vld [vmem:[%s5850_s4 + $0x630] sm:$0xff]  ;;  %v4285_v45 = vpack.c.bf16 %v3483_v24, %v3479_v4  ;;  %v3523_v4 = vld [vmem:[%s5850_s4 + $0x760] sm:$0xff]  ;;  %v4303_v24 = vpack.c.bf16 %v3524_v49, %v3520_v11 }
 0x53b   : > { %4234 = vmatpush1.bf16.msra.mxu0 %v4233_v46  ;;  %4266 = vmatpush1.bf16.msra.mxu1 %v4265_v32  ;;  %v4317_v46 = vpack.c.bf16 %v3485_v31, %v3481_v44  ;;  %v3487_v32 = vld [vmem:[%s5850_s4 + $0x640] sm:$0xff]  ;;  %v3525_v44 = vld [vmem:[%s5850_s4 + $0x770] sm:$0xff]  ;;  %v3528_v31 = vld [vmem:[%s5850_s4 + $0x788] sm:$0xff] }
 0x53c   : > { %4236 = vmatprep.subr.bf16.mxu0 %v4235_v25  ;;  %4268 = vmatprep.subr.bf16.mxu1 %v4267_v28  ;;  %v2705_v25 = vld [vmem:[#allocation2 + $0x2] sm:$0x1]  ;;  %v4287_v28 = vpack.c.bf16 %v3492_v37, %v3488_v0  ;;  %v3532_v0 = vld [vmem:[%s5850_s4 + $0x7a8] sm:$0xff]  ;;  %v3534_v37 = vld [vmem:[%s5850_s4 + $0x7b8] sm:$0xff] }
 0x53d   : > { %v2775_v19 = vsel %vm2300_vm3, %v2774_v35, %v2705_v25  ;;  %v3530_v35 = vld [vmem:[%s5850_s4 + $0x798] sm:$0xff]  ;;  %v3533_v25 = vld [vmem:[%s5850_s4 + $0x7b0] sm:$0xff] }
 0x53f   : > { %4238 = vmatpush1.bf16.msra.mxu0 %v4237_v38  ;;  %4270 = vmatpush1.bf16.msra.mxu1 %v4269_v54  ;;  %v3502_v38 = vld [vmem:[%s5850_s4 + $0x6b8] sm:$0xff]  ;;  %v4289_v54 = vpack.c.bf16 %v3491_v36, %v3487_v32  ;;  %v4307_v32 = vpack.c.bf16 %v3532_v0, %v3528_v31  ;;  %v4339_v36 = vpack.c.bf16 %v3534_v37, %v3530_v35 }
 0x540   : > { %4240 = vmatprep.subr.bf16.mxu0 %v4239_v58  ;;  %4272 = vmatprep.subr.bf16.mxu1 %v4271_v10  ;;  %v3499_v58 = vld [vmem:[%s5850_s4 + $0x6a0] sm:$0xff]  ;;  %v4291_v10 = vpack.c.bf16 %v3500_v51, %v3496_v48  ;;  %v4323_v13 = vpack.c.bf16 %v3502_v38, %v3498_v52  ;;  %v3542_v48 = vld [vmem:[%s5850_s4 + $0x7f8] sm:$0xff]  ;;  %v4341_v51 = vpack.c.bf16 %v3533_v25, %v3529_v7 }
 0x541   : > { %v3535_v52 = vld [vmem:[%s5850_s4 + $0x7c0] sm:$0xff] }
 0x543   : > { %4242 = vmatpush1.bf16.msra.mxu0 %v4241_v23  ;;  %4274 = vmatpush1.bf16.msra.mxu1 %v4273_v56  ;;  %v3510_v23 = vld [vmem:[%s5850_s4 + $0x6f8] sm:$0xff]  ;;  %v4293_v56 = vpack.c.bf16 %v3499_v58, %v3495_v39  ;;  %v3537_v39 = vld [vmem:[%s5850_s4 + $0x7d0] sm:$0xff] }
 0x544   : > { %4244 = vmatprep.subr.bf16.mxu0 %v4243_v15  ;;  %4276 = vmatprep.subr.bf16.mxu1 %v4275_v62  ;;  %v3507_v15 = vld [vmem:[%s5850_s4 + $0x6e0] sm:$0xff]  ;;  %v4295_v62 = vpack.c.bf16 %v3508_v42, %v3504_v61  ;;  %v4327_v30 = vpack.c.bf16 %v3510_v23, %v3506_v26  ;;  %v3541_v58 = vld [vmem:[%s5850_s4 + $0x7f0] sm:$0xff]  ;;  %v4505_v26 = vmov 1983009808  }
 0x545   : > { %v4345_v53 = vpack.c.bf16 %v3541_v58, %v3537_v39  ;;  %v2942_v61 = vld [vmem:[#allocation2 + $0x3] sm:$0x1]  ;;  %v2452_v23 = vunpack.c.l.s4 %v4505_v26 }
 0x547   : > { %4246 = vmatpush1.bf16.msra.mxu0 %v4245_v21  ;;  %4278 = vmatpush1.bf16.msra.mxu1 %v4277_v50  ;;  %v4297_v21 = vpack.c.bf16 %v3507_v15, %v3503_v59 }
 0x548   : > { %4248 = vmatprep.subr.bf16.mxu0 %v4247_v63  ;;  %4280 = vmatprep.subr.bf16.mxu1 %v4279_v16  ;;  %v4299_v63 = vpack.c.bf16 %v3516_v60, %v3512_v18  ;;  %v4331_v16 = vpack.c.bf16 %v3518_v3, %v3514_v2 }
 0x54b   : > { %4250 = vmatpush1.bf16.msra.mxu0 %v4249_v41  ;;  %4282 = vmatpush1.bf16.msra.mxu1 %v4281_v14  ;;  %v4333_v41 = vpack.c.bf16 %v3517_v6, %v3513_v22  ;;  %v3519_v14 = vld [vmem:[%s5850_s4 + $0x740] sm:$0xff] }
 0x54c   : > { %4284 = vmatprep.subr.bf16.mxu0 %v4283_v43  ;;  %4316 = vmatprep.subr.bf16.mxu1 %v4315_v27  ;;  %v4335_v43 = vpack.c.bf16 %v3526_v34, %v3522_v20  ;;  %v3521_v27 = vld [vmem:[%s5850_s4 + $0x750] sm:$0xff]  ;;  %v4305_v40 = vpack.c.bf16 %v3523_v4, %v3519_v14  ;;  %v2230_v6 = vld [vmem:[%s220_s8] sm:$0xff] }
 0x54d   : > { %v4337_v8 = vpack.c.bf16 %v3525_v44, %v3521_v27 }
 0x54e   : > { %2842 = vmatmul.mubr.f32.vlgmr.msra.gmra.mrb[48].mxu0 %v2775_v19  ;;  %2913 = vmatmul.mubr.f32.vlgmr.msra.gmra.mrb[48].mxu1 %v2775_v19 }
 0x54f   : > { %4286 = vmatpush1.bf16.msra.mxu0 %v4285_v45  ;;  %4318 = vmatpush1.bf16.msra.mxu1 %v4317_v46  ;;  %v3527_v45 = vld [vmem:[%s5850_s4 + $0x780] sm:$0xff] }
 0x550   : > { %4288 = vmatprep.subr.bf16.mxu0 %v4287_v28  ;;  %4320 = vmatprep.subr.bf16.mxu1 %v4319_v29  ;;  %v3531_v46 = vld [vmem:[%s5850_s4 + $0x7a0] sm:$0xff]  ;;  %v3536_v28 = vld [vmem:[%s5850_s4 + $0x7c8] sm:$0xff] }
 0x551   : > { %3078 = vmatprep.mubr.f32.mxu0 %v4501_v1  ;;  %3149 = vmatprep.mubr.f32.mxu1 %v4501_v1  ;;  %v3505_v1 = vld [vmem:[%s5850_s4 + $0x6d0] sm:$0xff]  ;;  %v3540_v29 = vld [vmem:[%s5850_s4 + $0x7e8] sm:$0xff]  ;;  %v4309_v19 = vpack.c.bf16 %v3531_v46, %v3527_v45 }
 0x552   : > { %v4329_v50 = vpack.c.bf16 %v3509_v33, %v3505_v1  ;;  %v4311_v38 = vpack.c.bf16 %v3540_v29, %v3536_v28 }
 0x553   : > { %4290 = vmatpush1.bf16.msra.mxu0 %v4289_v54  ;;  %4322 = vmatpush1.bf16.msra.mxu1 %v4321_v55  ;;  %v4343_v54 = vpack.c.bf16 %v3542_v48, %v3538_v47  ;;  %v3539_v55 = vld [vmem:[%s5850_s4 + $0x7e0] sm:$0xff] }
 0x554   : > { %4292 = vmatprep.subr.bf16.mxu0 %v4291_v10  ;;  %4324 = vmatprep.subr.bf16.mxu1 %v4323_v13  ;;  %v2943_v10 = vld [vmem:[#allocation2 + $0x7] sm:$0x1]  ;;  %v4313_v13 = vpack.c.bf16 %v3539_v55, %v3535_v52 }
 0x555   : > { %v3011_v12 = vrot.slane %v2943_v10, 7 }
 0x557   : > { %4294 = vmatpush1.bf16.msra.mxu0 %v4293_v56  ;;  %4326 = vmatpush1.bf16.msra.mxu1 %v4325_v57  ;;  %v3012_v42 = vsel %vm2300_vm3, %v3011_v12, %v2942_v61  ;;  %v2454_v56 = vlaneseq  ;;  %v2453_v57 = vunpack.c.0.s8 %v2452_v23 }
 0x558   : > { %4296 = vmatprep.subr.bf16.mxu0 %v4295_v62  ;;  %4328 = vmatprep.subr.bf16.mxu1 %v4327_v30 }
 0x559   : > { %v2455_v59 = vshrl.u32 %v2454_v56, 7 }
 0x55b   : > { %4298 = vmatpush1.bf16.msra.mxu0 %v4297_v21  ;;  %4330 = vmatpush1.bf16.msra.mxu1 %v4329_v50  ;;  %v2456_v30 = vsub.s32 %v2453_v57, %v2455_v59 }
 0x55c   : > { %4300 = vmatprep.subr.bf16.mxu0 %v4299_v63  ;;  %4332 = vmatprep.subr.bf16.mxu1 %v4331_v16 }
 0x55f   : > { %4302 = vmatpush1.bf16.msra.mxu0 %v4301_v17  ;;  %4334 = vmatpush1.bf16.msra.mxu1 %v4333_v41 }
 0x560   : > { %4304 = vmatprep.subr.bf16.mxu0 %v4303_v24  ;;  %4336 = vmatprep.subr.bf16.mxu1 %v4335_v43 }
 0x563   : > { %4306 = vmatpush1.bf16.msra.mxu0 %v4305_v40  ;;  %4338 = vmatpush1.bf16.msra.mxu1 %v4337_v8 }
 0x564   : > { %4308 = vmatprep.subr.bf16.mxu0 %v4307_v32  ;;  %4340 = vmatprep.subr.bf16.mxu1 %v4339_v36 }
 0x567   : > { %4310 = vmatpush1.bf16.msra.mxu0 %v4309_v19  ;;  %4342 = vmatpush1.bf16.msra.mxu1 %v4341_v51 }
 0x568   : > { %4312 = vmatprep.subr.bf16.mxu0 %v4311_v38  ;;  %4344 = vmatprep.subr.bf16.mxu1 %v4343_v54 }
 0x56b   : > { %4314 = vmatpush1.bf16.msra.mxu0 %v4313_v13  ;;  %4346 = vmatpush1.bf16.msra.mxu1 %v4345_v53 }
 0x56e   : > { %3079 = vmatmul.mubr.f32.vlgmr.msra.gmra.mrb[50].mxu0 %v3012_v42  ;;  %3150 = vmatmul.mubr.f32.vlgmr.msra.gmra.mrb[50].mxu1 %v3012_v42 }
 0x5e1   : > { %v2369_v15 = vpop.f32.mrb[44].mxu0  ;;  %v2440_v62 = vpop.f32.mrb[44].mxu1 }
 0x5e2   : > { %v2371_v1 = vpop.f32.mrb[45].mxu0  ;;  %v2442_v33 = vpop.f32.mrb[45].mxu1 }
 0x5e3   : > { %v2449_v18 = vcombine.low %v2369_v15, %v2371_v1  ;;  %v2450_v60 = vcombine.low %v2440_v62, %v2442_v33 }
 0x5e5   : > { %v2457_v2 = vrot.slane %v2449_v18, %v2456_v30  ;;  %v2464_v3 = vrot.slane %v2450_v60, %v2456_v30 }
 0x5e7   : > { %v2465_v21 = vcombine.low %v2457_v2, %v2464_v3 }
 0x5e9   : > { %v2467_v20 = vadd.f32 %v2465_v21, %v2230_v6 }
 0x601   : > { %v2606_v50 = vpop.f32.mrb[46].mxu0  ;;  %v2677_v9 = vpop.f32.mrb[46].mxu1 }
 0x602   : > { %v2608_v5 = vpop.f32.mrb[47].mxu0  ;;  %v2679_v63 = vpop.f32.mrb[47].mxu1 }
 0x603   : > { %v2686_v16 = vcombine.low %v2606_v50, %v2608_v5  ;;  %v2687_v22 = vcombine.low %v2677_v9, %v2679_v63 }
 0x605   : > { %v2694_v11 = vrot.slane %v2686_v16, %v2456_v30  ;;  %v2701_v49 = vrot.slane %v2687_v22, %v2456_v30 }
 0x607   : > { %v2702_v34 = vcombine.low %v2694_v11, %v2701_v49 }
 0x609   : > { %v2704_v17 = vadd.f32 %v2702_v34, %v2467_v20 }
 0x621   : > { %v2843_v41 = vpop.f32.mrb[48].mxu0  ;;  %v2914_v14 = vpop.f32.mrb[48].mxu1 }
 0x622   : > { %v2845_v4 = vpop.f32.mrb[49].mxu0  ;;  %v2916_v24 = vpop.f32.mrb[49].mxu1 }
 0x623   : > { %v2923_v43 = vcombine.low %v2843_v41, %v2845_v4  ;;  %v2924_v27 = vcombine.low %v2914_v14, %v2916_v24 }
 0x625   : > { %v2931_v44 = vrot.slane %v2923_v43, %v2456_v30  ;;  %v2938_v31 = vrot.slane %v2924_v27, %v2456_v30 }
 0x627   : > { %v2939_v0 = vcombine.low %v2931_v44, %v2938_v31 }
 0x629   : > { %v2941_v35 = vadd.f32 %v2939_v0, %v2704_v17 }
 0x641   : > { %v3080_v37 = vpop.f32.mrb[50].mxu0  ;;  %v3151_v40 = vpop.f32.mrb[50].mxu1 }
 0x642   : > { %v3082_v8 = vpop.f32.mrb[51].mxu0  ;;  %v3153_v45 = vpop.f32.mrb[51].mxu1 }
 0x643   : > { %v3160_v46 = vcombine.low %v3080_v37, %v3082_v8  ;;  %v3161_v32 = vcombine.low %v3151_v40, %v3153_v45 }
 0x645   : > { %v3168_v36 = vrot.slane %v3160_v46, %v2456_v30  ;;  %v3175_v7 = vrot.slane %v3161_v32, %v2456_v30 }
 0x647   : > { %v3176_v25 = vcombine.low %v3168_v36, %v3175_v7 }
 0x649   : > { %v3178_v28 = vadd.f32 %v3176_v25, %v2941_v35 }
 0x64b   : > { %3179 = vst [vmem:[%s226_s10] sm:$0xff] %v3178_v28 }
 0x64c PF: > { %s15_s18 = sadd.s32 1, %s4499_s18  }
 0x64d   : > { %p12_p4 = scmp.ge.s32.totalorder %s15_s18, 4  }
 0x64f   :  { %14 = sbr.rel (!%p12_p4) target bundleno = 1 (0x1), region = 83 }

</bundles_post_ra>
